<compile_context>
chip_gen: v6e
topology: v6e:2x2x1
jax: 0.10.0
libtpu: 0.0.40
codegen_flags: <defaults>
</compile_context>

<pallas_src>
import functools

import jax
import jax.numpy as jnp
from jax.experimental import pallas as pl
from jax.experimental.pallas import tpu as pltpu


def _round_up(x, m):
    return ((x + m - 1) // m) * m


BIG = 1e9          # projected coordinate assigned to clipped / padded vertices
TIE_EPS = 1e-6     # exact-tie tolerance for the nearest-vertex set


# ----------------------------------------------------------------------------
# Kernel: one (batch, pixel-tile, vertex-tile) grid step of the point splat.
#   va_ref     (1, TILE_V, 8) f32 : [-2*xs, -2*ys, xs^2+ys^2, 1, 0, 0, 0, 0]
#   colors_ref (8, TILE_V)   bf16 : rows [R, G, B, valid-count, 0, 0, 0, 0]
#   pb_ref     (8, TILE_P)   f32  : rows [px, py, 1, px^2+py^2, 0, 0, 0, 0]
#   out_ref    (1, 4, TILE_P) f32 : RGBA, channel-major (lane-dense stores)
#   d2min_sc   (1, TILE_P)   f32  : running min squared distance (scratch)
#   rgbc_sc    (8, TILE_P)   f32  : running RGB sums + nearest-vertex count
# ----------------------------------------------------------------------------
def _raster_kernel(va_ref, colors_ref, pb_ref, out_ref, d2min_sc, rgbc_sc, *, r2):
    vt = pl.program_id(2)

    @pl.when(vt == 0)
    def _():
        d2min_sc[...] = jnp.full_like(d2min_sc, 1e30)
        rgbc_sc[...] = jnp.zeros_like(rgbc_sc)

    # Full squared-distance field in a single MXU pass (keeps the VPU free for
    # the min / compare work).  HIGHEST keeps f32 accuracy on the MXU.
    d2 = jnp.dot(va_ref[0], pb_ref[...],
                 preferred_element_type=jnp.float32,
                 precision=jax.lax.Precision.HIGHEST)            # (TILE_V, TILE_P)

    d2min_new = jnp.minimum(d2min_sc[...], jnp.min(d2, axis=0, keepdims=True))
    # Online argmin: drop previously accumulated colors if this vertex tile
    # found a strictly smaller distance ({0,1} rescale, flash-attention style).
    keep = jnp.where(d2min_sc[...] <= d2min_new + TIE_EPS, 1.0, 0.0)   # (1, TILE_P)
    near = jnp.where(d2 <= d2min_new + TIE_EPS, 1.0, 0.0).astype(jnp.bfloat16)
    rgbc_sc[...] = keep * rgbc_sc[...] + jnp.dot(
        colors_ref[...], near, preferred_element_type=jnp.float32)    # (8, TILE_P)
    d2min_sc[...] = d2min_new

    @pl.when(vt == pl.num_programs(2) - 1)
    def _():
        # Clipped / padded vertices carry d2 ~ 1e18 >> r2, so they never "hit"
        # and the splat is zeroed even if they dominate the nearest set.
        hit = jnp.where(d2min_sc[...] <= r2, 1.0, 0.0)                 # (1, TILE_P)
        scale = hit * pl.reciprocal(jnp.maximum(rgbc_sc[3:4, :], 1.0), approx=True)
        out_ref[0, 0:3, :] = rgbc_sc[0:3, :] * scale
        out_ref[0, 3:4, :] = hit


# ----------------------------------------------------------------------------
# Forward pass (mirrors DRender_ply.forward)
# ----------------------------------------------------------------------------
def drender_ply_forward(input_w2c, verts, vert_colors, intrinsic, width, height,
                        splat_radius=1.0, near_clip=1e-2):
    b = input_w2c.shape[0]
    intr = jnp.asarray(intrinsic, jnp.float32).reshape(-1)
    # The original module passes a single scalar focal length (intrinsic[0])
    # and principal point (intrinsic[2], intrinsic[6]) to the camera.
    focal, cx, cy = intr[0], intr[2], intr[6]

    edge = float(max(width, height))
    half = 0.5 * edge                     # center coords -> better f32 precision

    # ---- plain JAX, O(V): Rz sign-flip, camera transform, pinhole projection.
    # Rz = diag(-1,-1,1,1): Rz @ input_w2c just flips rows 0 and 1.
    sign = jnp.array([-1.0, -1.0, 1.0, 1.0], jnp.float32)
    w2c = input_w2c.astype(jnp.float32) * sign[None, :, None]

    num_v = verts.shape[0]
    v128 = max(128, _round_up(num_v, 128))
    tile_v = min(512, v128)               # multiple of 128
    v_pad = _round_up(v128, tile_v)
    n_vt = v_pad // tile_v

    verts_h = jnp.zeros((v_pad, 4), jnp.float32)
    verts_h = verts_h.at[:num_v, :3].set(verts.astype(jnp.float32))
    verts_h = verts_h.at[:num_v, 3].set(1.0)

    cam = jnp.einsum('bij,vj->bvi', w2c, verts_h)             # (b, V_pad, 4)
    x, y, z = cam[..., 0], cam[..., 1], cam[..., 2]
    valid = z > near_clip                                     # also clips pads (z == 0)
    inv_z = 1.0 / jnp.where(valid, z, 1.0)
    xs = jnp.where(valid, focal * x * inv_z + cx - half, BIG)
    ys = jnp.where(valid, focal * y * inv_z + cy - half, BIG)

    va = jnp.zeros((b, v_pad, 8), jnp.float32)
    va = va.at[..., 0].set(-2.0 * xs)
    va = va.at[..., 1].set(-2.0 * ys)
    va = va.at[..., 2].set(xs * xs + ys * ys)
    va = va.at[..., 3].set(1.0)

    colors_aug = jnp.zeros((8, v_pad), jnp.float32)
    colors_aug = colors_aug.at[:3, :num_v].set(vert_colors.astype(jnp.float32).T)
    colors_aug = colors_aug.at[3, :num_v].set(1.0)
    colors_aug = colors_aug.astype(jnp.bfloat16)

    # ---- pixel-center operand for the cropped window only.
    col_off = max(0, height - width)      # width < height crops leading columns
    n_pix = height * width                # width > height keeps first rows (off 0)

    # Pixel tile from a VMEM budget (dominant temporaries scale with TILE_V*TILE_P).
    vmem_budget = 20 << 20                # conservative: fits v7x 32 MiB scoped default
    tile_p_cap = max(256, ((vmem_budget // (3 * tile_v * 4)) // 128) * 128)
    tile_p = min(2048, tile_p_cap, _round_up(n_pix, 128))
    p_pad = _round_up(n_pix, tile_p)
    n_pt = p_pad // tile_p

    pid = jnp.arange(p_pad, dtype=jnp.int32)
    px = (pid % width + col_off).astype(jnp.float32) + 0.5 - half
    py = (pid // width).astype(jnp.float32) + 0.5 - half
    pb = jnp.zeros((8, p_pad), jnp.float32)
    pb = pb.at[0].set(px)
    pb = pb.at[1].set(py)
    pb = pb.at[2].set(1.0)
    pb = pb.at[3].set(px * px + py * py)

    kern = functools.partial(_raster_kernel, r2=float(splat_radius) ** 2)

    # VMEM estimate: d2 (f32) + near (bf16) + masks over (TILE_V, TILE_P),
    # plus double-buffered I/O blocks and scratch; 2x safety margin.
    est = (3 * tile_v * tile_p * 4
           + 2 * (tile_v * 8 * 4 + 8 * tile_v * 2 + 8 * tile_p * 4 + 8 * tile_p * 4)
           + 16 * tile_p * 4 + (1 << 20))
    vmem_limit = int(min(48 << 20, max(20 << 20, 2 * est)))

    out = pl.pallas_call(
        kern,
        out_shape=jax.ShapeDtypeStruct((b, 4, p_pad), jnp.float32),
        grid=(b, n_pt, n_vt),
        in_specs=[
            pl.BlockSpec((1, tile_v, 8), lambda i, t, v: (i, v, 0)),   # projected verts
            pl.BlockSpec((8, tile_v), lambda i, t, v: (0, v)),          # colors (bf16)
            pl.BlockSpec((8, tile_p), lambda i, t, v: (0, t)),          # pixel centers
        ],
        out_specs=pl.BlockSpec((1, 4, tile_p), lambda i, t, v: (i, 0, t)),
        scratch_shapes=[pltpu.VMEM((1, tile_p), jnp.float32),           # running d2min
                        pltpu.VMEM((8, tile_p), jnp.float32)],          # RGB sums + count
        compiler_params=pltpu.CompilerParams(
            dimension_semantics=("parallel", "parallel", "arbitrary"),
            vmem_limit_bytes=vmem_limit),
    )(va, colors_aug, pb)

    # Channel-major -> NHWC (layout plumbing in plain JAX).
    imgs = jnp.transpose(out[:, :, :n_pix], (0, 2, 1)).reshape(b, height, width, 4)
    color_render = imgs[..., :3]
    # mask_render[mask != 0] = 1 — alpha is already exactly {0, 1}; the where is
    # a free fused XLA op kept to preserve the original semantics.
    mask_render = jnp.where(imgs[..., 3:4] != 0.0, 1.0, 0.0)
    return color_render, mask_render


if __name__ == "__main__":
    key = jax.random.PRNGKey(0)
    k_verts, k_cols = jax.random.split(key, 2)

    b, num_v = 2, 64
    width, height = 12, 16
    # Deterministic synthetic intrinsics (module loads intrinsic.txt -> 16 vals).
    intrinsic = [20.0, 0.0, 8.0, 0.0,
                 0.0, 20.0, 8.0, 0.0,
                 0.0, 0.0, 1.0, 0.0,
                 0.0, 0.0, 0.0, 1.0]

    # input_w2c: identity rotation, camera ~3m (+ per-batch delta) away.
    eye = jnp.broadcast_to(jnp.eye(4, dtype=jnp.float32)[None], (b, 4, 4))
    trans = jnp.stack(
        [jnp.zeros((b,), jnp.float32),
         jnp.zeros((b,), jnp.float32),
         3.0 + 0.2 * jnp.arange(b, dtype=jnp.float32)], axis=1)
    input_w2c = eye.at[:, :3, 3].set(trans)

    verts = jax.random.uniform(k_verts, (num_v, 3), jnp.float32, -0.5, 0.5)
    vert_colors = jax.random.uniform(k_cols, (num_v, 3), jnp.float32, 0.0, 1.0)

    color_render, mask_render = drender_ply_forward(
        input_w2c, verts, vert_colors, intrinsic, width, height)
    jax.block_until_ready((color_render, mask_render))

    assert color_render.shape == (b, height, width, 3), color_render.shape
    assert mask_render.shape == (b, height, width, 1), mask_render.shape
    assert color_render.dtype == jnp.float32 and mask_render.dtype == jnp.float32
    assert bool(jnp.all(jnp.isfinite(color_render)))
    assert bool(jnp.all((mask_render == 0.0) | (mask_render == 1.0)))
    print("KERNEL_OK")
</pallas_src>

<mosaic_0001>
module attributes {stable_mosaic.version = 11 : i64} {
  func.func @_raster_kernel(%arg0: i32, %arg1: i32, %arg2: i32, %arg3: memref<1x128x8xf32, #tpu.memory_space<vmem>>, %arg4: memref<8x128xbf16, #tpu.memory_space<vmem>>, %arg5: memref<8x256xf32, #tpu.memory_space<vmem>>, %arg6: memref<1x4x256xf32, #tpu.memory_space<vmem>>, %arg7: memref<1x256xf32, #tpu.memory_space<vmem>>, %arg8: memref<8x256xf32, #tpu.memory_space<vmem>>) attributes {dimension_semantics = [#tpu.dimension_semantics<parallel>, #tpu.dimension_semantics<parallel>, #tpu.dimension_semantics<arbitrary>], iteration_bounds = array<i64: 2, 1, 1>, scalar_prefetch = 0 : i64, scratch_operands = 2 : i64, tpu.core_type = #tpu.core_type<tc>, window_params = [{transform_indices = @transform_0, window_bounds = array<i64: 1, 128, 8>}, {transform_indices = @transform_1, window_bounds = array<i64: 8, 128>}, {transform_indices = @transform_2, window_bounds = array<i64: 8, 256>}, {transform_indices = @transform_3, window_bounds = array<i64: 1, 4, 256>}]} {
    %c0_i32 = arith.constant 0 : i32
    %0 = arith.cmpi eq, %arg2, %c0_i32 : i32
    %1 = arith.extui %0 : i1 to i32
    %c0_i32_0 = arith.constant 0 : i32
    %2 = arith.cmpi ne, %1, %c0_i32_0 : i32
    scf.if %2 {
      %cst_27 = arith.constant 1.000000e+30 : f32
      %37 = vector.broadcast %cst_27 : f32 to vector<1x256xf32>
      %c0_28 = arith.constant 0 : index
      %c0_29 = arith.constant 0 : index
      %38 = vector.load %arg7[%c0_28, %c0_29] : memref<1x256xf32, #tpu.memory_space<vmem>>, vector<1x256xf32>
      tpu.vector_store %arg7[%c0_28, %c0_29], %37 {strides = array<i32>} : memref<1x256xf32, #tpu.memory_space<vmem>>, vector<1x256xf32>,
      %cst_30 = arith.constant 0.000000e+00 : f32
      %39 = vector.broadcast %cst_30 : f32 to vector<8x256xf32>
      %c0_31 = arith.constant 0 : index
      %c0_32 = arith.constant 0 : index
      %40 = vector.load %arg8[%c0_31, %c0_32] : memref<8x256xf32, #tpu.memory_space<vmem>>, vector<8x256xf32>
      tpu.vector_store %arg8[%c0_31, %c0_32], %39 {strides = array<i32>} : memref<8x256xf32, #tpu.memory_space<vmem>>, vector<8x256xf32>,
    } else {
    }
    %c0 = arith.constant 0 : index
    %c0_1 = arith.constant 0 : index
    %c0_2 = arith.constant 0 : index
    %3 = vector.load %arg3[%c0, %c0_1, %c0_2] : memref<1x128x8xf32, #tpu.memory_space<vmem>>, vector<1x128x8xf32>
    %4 = vector.shape_cast %3 : vector<1x128x8xf32> to vector<128x8xf32>
    %c0_3 = arith.constant 0 : index
    %c0_4 = arith.constant 0 : index
    %5 = vector.load %arg5[%c0_3, %c0_4] : memref<8x256xf32, #tpu.memory_space<vmem>>, vector<8x256xf32>
    %cst = arith.constant dense<0.000000e+00> : vector<128x256xf32>
    %6 = tpu.matmul %4, %5, %cst {dimension_numbers = #tpu.dot_dimension_numbers<[1], [0], [0], [1], [0, 0, 1, 1], [], []>, precision = #tpu.contract_precision<fp32>} : vector<128x8xf32>, vector<8x256xf32>, vector<128x256xf32> -> vector<128x256xf32>
    %c0_5 = arith.constant 0 : index
    %c0_6 = arith.constant 0 : index
    %7 = vector.load %arg7[%c0_5, %c0_6] : memref<1x256xf32, #tpu.memory_space<vmem>>, vector<1x256xf32>
    %cst_7 = arith.constant dense<0x7F800000> : vector<256xf32>
    %8 = vector.multi_reduction <minimumf>, %6, %cst_7 [0] : vector<128x256xf32> to vector<256xf32>
    %9 = vector.shape_cast %8 : vector<256xf32> to vector<1x256xf32>
    %10 = arith.minimumf %7, %9 : vector<1x256xf32>
    %c0_8 = arith.constant 0 : index
    %c0_9 = arith.constant 0 : index
    %11 = vector.load %arg7[%c0_8, %c0_9] : memref<1x256xf32, #tpu.memory_space<vmem>>, vector<1x256xf32>
    %cst_10 = arith.constant 9.99999997E-7 : f32
    %12 = vector.broadcast %cst_10 : f32 to vector<1x256xf32>
    %13 = arith.addf %10, %12 : vector<1x256xf32>
    %14 = arith.cmpf ole, %11, %13 : vector<1x256xf32>
    %cst_11 = arith.constant 1.000000e+00 : f32
    %cst_12 = arith.constant 0.000000e+00 : f32
    %15 = vector.broadcast %cst_11 : f32 to vector<1x256xf32>
    %16 = vector.broadcast %cst_12 : f32 to vector<1x256xf32>
    %17 = arith.select %14, %15, %16 : vector<1x256xi1>, vector<1x256xf32>
    %cst_13 = arith.constant 9.99999997E-7 : f32
    %18 = vector.broadcast %cst_13 : f32 to vector<1x256xf32>
    %19 = arith.addf %10, %18 : vector<1x256xf32>
    %20 = vector.broadcast %19 : vector<1x256xf32> to vector<128x256xf32>
    %21 = arith.cmpf ole, %6, %20 : vector<128x256xf32>
    %cst_14 = arith.constant 1.000000e+00 : f32
    %cst_15 = arith.constant 0.000000e+00 : f32
    %22 = vector.broadcast %cst_14 : f32 to vector<128x256xf32>
    %23 = vector.broadcast %cst_15 : f32 to vector<128x256xf32>
    %24 = arith.select %21, %22, %23 : vector<128x256xi1>, vector<128x256xf32>
    %25 = arith.truncf %24 : vector<128x256xf32> to vector<128x256xbf16>
    %c0_16 = arith.constant 0 : index
    %c0_17 = arith.constant 0 : index
    %26 = vector.load %arg8[%c0_16, %c0_17] : memref<8x256xf32, #tpu.memory_space<vmem>>, vector<8x256xf32>
    %27 = vector.broadcast %17 : vector<1x256xf32> to vector<8x256xf32>
    %28 = arith.mulf %27, %26 : vector<8x256xf32>
    %c0_18 = arith.constant 0 : index
    %c0_19 = arith.constant 0 : index
    %29 = vector.load %arg4[%c0_18, %c0_19] : memref<8x128xbf16, #tpu.memory_space<vmem>>, vector<8x128xbf16>
    %cst_20 = arith.constant dense<0.000000e+00> : vector<8x256xf32>
    %30 = tpu.matmul %29, %25, %cst_20 {dimension_numbers = #tpu.dot_dimension_numbers<[1], [0], [0], [1], [0, 0, 1, 1], [], []>} : vector<8x128xbf16>, vector<128x256xbf16>, vector<8x256xf32> -> vector<8x256xf32>
    %31 = arith.addf %28, %30 : vector<8x256xf32>
    %c0_21 = arith.constant 0 : index
    %c0_22 = arith.constant 0 : index
    %32 = vector.load %arg8[%c0_21, %c0_22] : memref<8x256xf32, #tpu.memory_space<vmem>>, vector<8x256xf32>
    tpu.vector_store %arg8[%c0_21, %c0_22], %31 {strides = array<i32>} : memref<8x256xf32, #tpu.memory_space<vmem>>, vector<8x256xf32>,
    %c0_23 = arith.constant 0 : index
    %c0_24 = arith.constant 0 : index
    %33 = vector.load %arg7[%c0_23, %c0_24] : memref<1x256xf32, #tpu.memory_space<vmem>>, vector<1x256xf32>
    tpu.vector_store %arg7[%c0_23, %c0_24], %10 {strides = array<i32>} : memref<1x256xf32, #tpu.memory_space<vmem>>, vector<1x256xf32>,
    %c0_i32_25 = arith.constant 0 : i32
    %34 = arith.cmpi eq, %arg2, %c0_i32_25 : i32
    %35 = arith.extui %34 : i1 to i32
    %c0_i32_26 = arith.constant 0 : i32
    %36 = arith.cmpi ne, %35, %c0_i32_26 : i32
    scf.if %36 {
      %c0_27 = arith.constant 0 : index
      %c0_28 = arith.constant 0 : index
      %37 = vector.load %arg7[%c0_27, %c0_28] : memref<1x256xf32, #tpu.memory_space<vmem>>, vector<1x256xf32>
      %cst_29 = arith.constant 1.000000e+00 : f32
      %38 = vector.broadcast %cst_29 : f32 to vector<1x256xf32>
      %39 = arith.cmpf ole, %37, %38 : vector<1x256xf32>
      %cst_30 = arith.constant 1.000000e+00 : f32
      %cst_31 = arith.constant 0.000000e+00 : f32
      %40 = vector.broadcast %cst_30 : f32 to vector<1x256xf32>
      %41 = vector.broadcast %cst_31 : f32 to vector<1x256xf32>
      %42 = arith.select %39, %40, %41 : vector<1x256xi1>, vector<1x256xf32>
      %c3 = arith.constant 3 : index
      %c0_32 = arith.constant 0 : index
      %43 = vector.load %arg8[%c3, %c0_32] : memref<8x256xf32, #tpu.memory_space<vmem>>, vector<1x256xf32>
      %cst_33 = arith.constant 1.000000e+00 : f32
      %44 = vector.broadcast %cst_33 : f32 to vector<1x256xf32>
      %45 = arith.maximumf %43, %44 : vector<1x256xf32>
      %46 = tpu.reciprocal %45 {approx = true} : vector<1x256xf32> -> vector<1x256xf32>
      %47 = arith.mulf %42, %46 : vector<1x256xf32>
      %c0_34 = arith.constant 0 : index
      %c0_35 = arith.constant 0 : index
      %48 = vector.load %arg8[%c0_34, %c0_35] : memref<8x256xf32, #tpu.memory_space<vmem>>, vector<3x256xf32>
      %49 = vector.broadcast %47 : vector<1x256xf32> to vector<3x256xf32>
      %50 = arith.mulf %48, %49 : vector<3x256xf32>
      %c0_36 = arith.constant 0 : index
      %c0_37 = arith.constant 0 : index
      %c0_38 = arith.constant 0 : index
      %51 = vector.load %arg6[%c0_36, %c0_37, %c0_38] : memref<1x4x256xf32, #tpu.memory_space<vmem>>, vector<1x3x256xf32>
      %52 = vector.shape_cast %51 : vector<1x3x256xf32> to vector<3x256xf32>
      %53 = vector.shape_cast %50 : vector<3x256xf32> to vector<1x3x256xf32>
      tpu.vector_store %arg6[%c0_36, %c0_37, %c0_38], %53 {strides = array<i32>} : memref<1x4x256xf32, #tpu.memory_space<vmem>>, vector<1x3x256xf32>,
      %c0_39 = arith.constant 0 : index
      %c3_40 = arith.constant 3 : index
      %c0_41 = arith.constant 0 : index
      %54 = vector.load %arg6[%c0_39, %c3_40, %c0_41] : memref<1x4x256xf32, #tpu.memory_space<vmem>>, vector<1x1x256xf32>
      %55 = vector.shape_cast %54 : vector<1x1x256xf32> to vector<1x256xf32>
      %56 = vector.shape_cast %42 : vector<1x256xf32> to vector<1x1x256xf32>
      tpu.vector_store %arg6[%c0_39, %c3_40, %c0_41], %56 {strides = array<i32>} : memref<1x4x256xf32, #tpu.memory_space<vmem>>, vector<1x1x256xf32>,
    } else {
    }
    return
  }
  func.func @transform_0(%arg0: i32, %arg1: i32, %arg2: i32) -> (i32, i32, i32) {
    %c0_i32 = arith.constant 0 : i32
    %c0_i32_0 = arith.constant 0 : i32
    return %arg0, %arg2, %c0_i32 : i32, i32, i32
  }
  func.func @transform_1(%arg0: i32, %arg1: i32, %arg2: i32) -> (i32, i32) {
    %c0_i32 = arith.constant 0 : i32
    %c0_i32_0 = arith.constant 0 : i32
    return %c0_i32, %arg2 : i32, i32
  }
  func.func @transform_2(%arg0: i32, %arg1: i32, %arg2: i32) -> (i32, i32) {
    %c0_i32 = arith.constant 0 : i32
    %c0_i32_0 = arith.constant 0 : i32
    return %c0_i32, %arg1 : i32, i32
  }
  func.func @transform_3(%arg0: i32, %arg1: i32, %arg2: i32) -> (i32, i32, i32) {
    %c0_i32 = arith.constant 0 : i32
    %c0_i32_0 = arith.constant 0 : i32
    return %arg0, %c0_i32, %arg1 : i32, i32, i32
  }
}

</mosaic_0001>

<bundles_post_ra>
// kernel: tpu_custom_call.1
= control target key start
LH: loop header
LB: loop body
LE: loop exit
PB: predicated region body
PF: predicated region fallthrough
CT: control target
= control target key end

     0   :  { %8 = vsyncpa [#allocation5], 0  ;;  %s3091_s0 = inlined_call_operand.vmem [shape: f32[2,128,8], index: 0, kind: input, shape index: {}]   ;;  %s3092_s1 = inlined_call_operand.vmem [shape: bf16[8,128], index: 1, kind: input, shape index: {}]   ;;  %s3093_s2 = inlined_call_operand.vmem [shape: f32[8,256], index: 2, kind: input, shape index: {}]   ;;  %s3094_s3 = inlined_call_operand.hbm [shape: f32[2,4,256], index: 3, kind: output, shape index: {}]  }
   0x1   :  { %10 = vsyncpa [#allocation5 + $0x1], 0  ;;  %s2124_s12 = smov 0   ;;  %s2126_s13 = smov 0  }
   0x2   :  { %s2128_s14 = smov 0   ;;  %s2130_s15 = smov 0  }
   0x3   :  { %s2132_s16 = smov 0   ;;  %s2134_s17 = smov 0  }
   0x4 LB: > { %s1906_s18 = sadd.s32 4294967295, %s2096_s17   ;;  %s1907_s19 = sadd.s32 4294967294, %s2096_s17   ;;  %s2096_s17 = sphi %s2134_s17, %s16_s17   ;;  %s2092_s16 = sphi %s2132_s16, %s3125_s16   ;;  %s2088_s15 = sphi %s2130_s15, %s3124_s15   ;;  %s2084_s14 = sphi %s2128_s14, %s3123_s14   ;;  %s2080_s13 = sphi %s2126_s13, %s3122_s13   ;;  %s2076_s12 = sphi %s2124_s12, %s3121_s12  }
   0x5   : > { %s35_s20 = sadd.s32 1, %s2092_s16  ;;  %s124_s21 = sadd.s32 1, %s2084_s14 }
   0x6   : > { %p37_p0 = scmp.ge.s32.totalorder %s35_s20, 2  ;;  %p134_p1 = scmp.ne.s32.totalorder %s2084_s14, %s2080_s13 }
   0x7   : > { %p135_p2 = scmp.eq.s32.totalorder %s1906_s18, 1  ;;  %p140_p3 = scmp.ne.s32.totalorder %s2080_s13, %s2076_s12 }
   0x8   : > { %s3127_s20 = smov (%p37_p0, %s35_s20), 0  ;;  %p141_p5 = scmp.eq.s32.totalorder %s1907_s19, 1 }
   0x9   : > { %p2164_p4 = por %p135_p2, %p134_p1  ;;  %s119_s23 = ssub.s32 %s2092_s16, %s3127_s20 }
   0xa   : > { %p1912_p6 = scmp.ge.s32.totalorder %s2096_s17, 1  ;;  %p122_p7 = scmp.eq.s32.totalorder %s119_s23, 0 }
   0xb   : > { %p2171_p8 = por %p141_p5, %p140_p3  ;;  %p188_p9 = scmp.lt.s32.totalorder %s2096_s17, 3 }
   0xc   : > { %s2177_s25 = scalar_select %p122_p7, %s2084_s14, %s124_s21  }
   0xd   : > { %p189_p10 = pnand %p1912_p6, %p188_p9 }
   0xf   : > { %192 = sbr.rel (%p189_p10) target bundleno = 732 (0x2dc), region = 32 }
  0x14   : > { %v275_v0 = vld [vmem:[%s3093_s2 + $0x8] sm:$0xff]  ;;  %v274_v1 = vld [vmem:[%s3093_s2] sm:$0xff]  ;;  %p226_p11 = scmp.lt.s32.totalorder %s2088_s15, 1  ;;  %v3095_v4 = vmov 0.0   ;;  %vm276_vm0 = vcmask 64512   ;;  %s222_s8 = sand.u32 1, %s2080_s13  }
  0x15   : > { %v2186_v2 = vand.u32 4294901760, %v275_v0  ;;  %v2188_v3 = vand.u32 4294901760, %v274_v1  ;;  %391 = vmatprep.mubr.f32.mxu0 %v3095_v4  ;;  %556 = vmatprep.mubr.f32.mxu1 %v3095_v4  ;;  %s1913_s9 = sshll.u32 %s222_s8, 3  ;;  %s1955_s19 = sshll.u32 %s2088_s15, 7 }
  0x16   : > { %s227_s30 = scalar_select %p226_p11, %s2088_s15, 1 }
  0x17   : > { %356 = vmatprep.subr.mxu0 %v2186_v2  ;;  %1956 = vmatprep.subr.mxu1 %v2186_v2  ;;  %v2196_v5 = vsub.f32 %v275_v0, %v2186_v2  ;;  %v2199_v6 = vsub.f32 %v274_v1, %v2188_v3  ;;  %s3003_s10 = scalar_lea.vmem [#allocation4], %s1913_s9  ;;  %s1795_s27 = scalar_lea.hbm %s3094_s3, %s1955_s19 }
  0x18   : > { %358 = vmatpush1.msra.mxu0 %v2188_v3  ;;  %1957 = vmatpush1.msra.mxu1 %v2188_v3  ;;  %s1954_s4 = sshll.u32 %s227_s30, 7  ;;  %s1797_s21 = sshll.u32 %s3003_s10, 4  ;;  %s1798_s21 = int_to_ptr.vmem [resolvable:$true] %s1797_s21 }
  0x19   : > { %s2206_s7 = scalar_lea.vmem %s3091_s0, %s1954_s4  ;;  %v600_v7 = vand.u32 4294901760, %v2196_v5  ;;  %787 = vmatprep.subr.mxu0 %v2196_v5  ;;  %v606_v14 = vand.u32 4294901760, %v2199_v6  ;;  %s1781_s28 = scalar_lea.sflag [#allocation5], %s222_s8 }
  0x1a   : > { %v258_v8 = vld [vmem:[%s2206_s7] sm:$0xff]  ;;  %v273_v9 = vld [vmem:[%s2206_s7 + $0x78] sm:$0xff]  ;;  %v259_v10 = vld [vmem:[%s2206_s7 + $0x8] sm:$0xff]  ;;  %s2020_s29 = scalar_lea.vmem %s1798_s21, 128  ;;  %s2103_s30 = smov [#allocation4]  }
  0x1b   : > { %v278_v11 = vsel %vm276_vm0, %v258_v8, 0  ;;  %v323_v12 = vsel %vm276_vm0, %v273_v9, 0  ;;  %v601_v13 = vsub.f32 %v2196_v5, %v600_v7  ;;  %v260_v15 = vld [vmem:[%s2206_s7 + $0x10] sm:$0xff]  ;;  %v261_v16 = vld [vmem:[%s2206_s7 + $0x18] sm:$0xff]  ;;  %v262_v17 = vld [vmem:[%s2206_s7 + $0x20] sm:$0xff]  ;;  %v281_v20 = vsel %vm276_vm0, %v259_v10, 0  ;;  %p2021_p12 = scmp.ne.s32.totalorder %s1798_s21, %s2020_s29 }
  0x1c   : > { %v2222_v18 = vand.u32 4294901760, %v278_v11  ;;  %v2224_v19 = vand.u32 4294901760, %v323_v12  ;;  %v284_v21 = vsel %vm276_vm0, %v260_v15, 0  ;;  %v2228_v23 = vand.u32 4294901760, %v281_v20  ;;  %v263_v35 = vld [vmem:[%s2206_s7 + $0x28] sm:$0xff]  ;;  %v264_v42 = vld [vmem:[%s2206_s7 + $0x30] sm:$0xff] }
  0x1d   : > { %v602_v22 = vand.u32 4294901760, %v601_v13  ;;  %v2230_v24 = vand.u32 4294901760, %v284_v21  ;;  %v287_v27 = vsel %vm276_vm0, %v261_v16, 0  ;;  %v290_v28 = vsel %vm276_vm0, %v262_v17, 0  ;;  %v265_v54 = vld [vmem:[%s2206_s7 + $0x38] sm:$0xff]  ;;  %v266_v61 = vld [vmem:[%s2206_s7 + $0x40] sm:$0xff]  ;;  %p2022_p13 = pnand %p2021_p12, %p2164_p4 }
  0x1e   : > { %v2233_v25 = vsub.f32 %v278_v11, %v2222_v18  ;;  %v2236_v26 = vsub.f32 %v323_v12, %v2224_v19  ;;  %v607_v29 = vsub.f32 %v2199_v6, %v606_v14  ;;  %v2244_v30 = vsub.f32 %v281_v20, %v2228_v23  ;;  %v268_v13 = vld [vmem:[%s2206_s7 + $0x50] sm:$0xff]  ;;  %s2024_s4 = sshll.u32 %s2103_s30, 4  ;;  %s2025_s4 = int_to_ptr.vmem [resolvable:$false] %s2024_s4 }
  0x1f   : > { %603 = vmatprep.subr.mxu1 %v602_v22  ;;  %v2247_v31 = vsub.f32 %v284_v21, %v2230_v24  ;;  %v2249_v32 = vand.u32 4294901760, %v287_v27  ;;  %v2255_v37 = vand.u32 4294901760, %v290_v28  ;;  %v293_v45 = vsel %vm276_vm0, %v263_v35, 0  ;;  %p2023_p0 = pneg %p2022_p13  ;;  %s2026_s15 = scalar_lea.vmem %s2025_s4, 256 }
  0x20   : > { %v394_v33 = vand.u32 4294901760, %v2233_v25  ;;  %v559_v34 = vand.u32 4294901760, %v2236_v26  ;;  %v405_v36 = vand.u32 4294901760, %v2244_v30  ;;  %v608_v43 = vand.u32 4294901760, %v607_v29  ;;  %p2027_p1 = scmp.lt.s32.totalorder %s1798_s21, %s2025_s4  ;;  %p2028_p2 = scmp.lt.s32.totalorder %s2026_s15, %s2020_s29 }
  0x21   : > { %v416_v40 = vand.u32 4294901760, %v2247_v31  ;;  %v2265_v41 = vsub.f32 %v287_v27, %v2249_v32  ;;  %v2273_v48 = vsub.f32 %v290_v28, %v2255_v37  ;;  %v296_v49 = vsel %vm276_vm0, %v264_v42, 0  ;;  %v269_v28 = vld [vmem:[%s2206_s7 + $0x58] sm:$0xff] }
  0x22   : > { %v395_v38 = vsub.f32 %v2233_v25, %v394_v33  ;;  %v560_v39 = vsub.f32 %v2236_v26, %v559_v34  ;;  %v406_v44 = vsub.f32 %v2244_v30, %v405_v36  ;;  %v2280_v53 = vand.u32 4294901760, %v293_v45  ;;  %p2029_p3 = por %p2028_p2, %p2027_p1 }
  0x23   : > { %v417_v51 = vsub.f32 %v2247_v31, %v416_v40  ;;  %v427_v52 = vand.u32 4294901760, %v2265_v41  ;;  %v2286_v55 = vand.u32 4294901760, %v296_v49  ;;  %v438_v58 = vand.u32 4294901760, %v2273_v48 }
  0x24   : > { %v396_v46 = vand.u32 4294901760, %v395_v38  ;;  %v561_v47 = vand.u32 4294901760, %v560_v39  ;;  %v407_v50 = vand.u32 4294901760, %v406_v44  ;;  %v2295_v59 = vsub.f32 %v293_v45, %v2280_v53  ;;  %p2030_p5 = pnand %p2029_p3, %p2023_p0 }
  0x25   : > { %v418_v56 = vand.u32 4294901760, %v417_v51  ;;  %v428_v57 = vsub.f32 %v2265_v41, %v427_v52  ;;  %v299_v60 = vsel %vm276_vm0, %v265_v54, 0  ;;  %v2305_v62 = vsub.f32 %v296_v49, %v2286_v55  ;;  %v271_v54 = vld [vmem:[%s2206_s7 + $0x68] sm:$0xff] }
  0x26   : > { %397 = vmatmul.mubr.f32.vlgmr.msra.gmra.mxu0 %v396_v46  ;;  %562 = vmatmul.mubr.f32.vlgmr.msra.gmra.mxu1 %v561_v47  ;;  %v439_v0 = vsub.f32 %v2273_v48, %v438_v58  ;;  %v449_v1 = vand.u32 4294901760, %v2295_v59  ;;  %v2313_v8 = vand.u32 4294901760, %v299_v60  ;;  %v302_v5 = vsel %vm276_vm0, %v266_v61, 0 }
  0x27   : > { %402 = vmatprep.mubr.f32.mxu0 %v3095_v4  ;;  %609 = vmatpush1.msra.mxu1 %v608_v43  ;;  %v429_v63 = vand.u32 4294901760, %v428_v57  ;;  %v2327_v12 = vand.u32 4294901760, %v302_v5  ;;  %v308_v17 = vsel %vm276_vm0, %v268_v13, 0  ;;  %v270_v43 = vld [vmem:[%s2206_s7 + $0x60] sm:$0xff]  ;;  %v311_v44 = vsel %vm276_vm0, %v269_v28, 0 }
  0x28   : > { %642 = vmatprep.mubr.f32.mxu1 %v3095_v4  ;;  %983 = vmatprep.subr.mxu1 %v2186_v2  ;;  %v440_v9 = vand.u32 4294901760, %v439_v0  ;;  %v450_v10 = vsub.f32 %v2295_v59, %v449_v1  ;;  %v2325_v11 = vsub.f32 %v299_v60, %v2313_v8  ;;  %v2347_v29 = vand.u32 4294901760, %v308_v17  ;;  %v272_v0 = vld [vmem:[%s2206_s7 + $0x70] sm:$0xff] }
  0x29   : > { %790 = vmatpush1.msra.mxu0 %v2199_v6  ;;  %v2340_v22 = vsub.f32 %v302_v5, %v2327_v12  ;;  %v314_v46 = vsel %vm276_vm0, %v270_v43, 0  ;;  %v2370_v51 = vand.u32 4294901760, %v311_v44  ;;  %v317_v5 = vsel %vm276_vm0, %v271_v54, 0 }
  0x2a   : > { %408 = vmatmul.mubr.f32.gmra.mxu0 %v407_v50  ;;  %644 = vmatmul.mubr.f32.vlgmr.msra.gmra.mxu1 %v2222_v18  ;;  %v451_v20 = vand.u32 4294901760, %v450_v10  ;;  %v471_v21 = vand.u32 4294901760, %v2325_v11  ;;  %v2362_v45 = vsub.f32 %v308_v17, %v2347_v29 }
  0x2b   : > { %413 = vmatprep.mubr.f32.mxu0 %v3095_v4  ;;  %649 = vmatprep.mubr.f32.mxu1 %v3095_v4  ;;  %v482_v39 = vand.u32 4294901760, %v2340_v22 }
  0x2c   : > { %985 = vmatpush1.msra.mxu1 %v2188_v3  ;;  %1196 = vmatprep.subr.mxu0 %v600_v7  ;;  %v460_v7 = vand.u32 4294901760, %v2305_v62  ;;  %v472_v38 = vsub.f32 %v2325_v11, %v471_v21  ;;  %v504_v61 = vand.u32 4294901760, %v2362_v45 }
  0x2d   : > { %1377 = vmatprep.subr.mxu1 %v2186_v2  ;;  %v267_v2 = vld [vmem:[%s2206_s7 + $0x48] sm:$0xff]  ;;  %v483_v49 = vsub.f32 %v2340_v22, %v482_v39 }
  0x2e   : > { %419 = vmatmul.mubr.f32.gmra.mxu0 %v418_v56  ;;  %651 = vmatmul.mubr.f32.gmra.mxu1 %v2228_v23  ;;  %v305_v15 = vsel %vm276_vm0, %v267_v2, 0  ;;  %v461_v16 = vsub.f32 %v2305_v62, %v460_v7  ;;  %v473_v47 = vand.u32 4294901760, %v472_v38  ;;  %v2375_v56 = vand.u32 4294901760, %v314_v46 }
  0x2f   : > { %424 = vmatprep.mubr.f32.mxu0 %v3095_v4  ;;  %656 = vmatprep.mubr.f32.mxu1 %v3095_v4  ;;  %v2342_v27 = vand.u32 4294901760, %v305_v15  ;;  %v484_v57 = vand.u32 4294901760, %v483_v49  ;;  %v505_v13 = vsub.f32 %v2362_v45, %v504_v61 }
  0x30   : > { %v462_v35 = vand.u32 4294901760, %v461_v16  ;;  %v2390_v2 = vsub.f32 %v314_v46, %v2375_v56  ;;  %v2398_v16 = vand.u32 4294901760, %v317_v5 }
  0x31   : > { %v2355_v42 = vsub.f32 %v305_v15, %v2342_v27 }
  0x32   : > { %430 = vmatmul.mubr.f32.gmra.mxu0 %v429_v63  ;;  %658 = vmatmul.mubr.f32.gmra.mxu1 %v2230_v24  ;;  %v2383_v63 = vsub.f32 %v311_v44, %v2370_v51  ;;  %v2410_v38 = vsub.f32 %v317_v5, %v2398_v16 }
  0x33   : > { %435 = vmatprep.mubr.f32.mxu0 %v3095_v4  ;;  %663 = vmatprep.mubr.f32.mxu1 %v3095_v4  ;;  %v493_v50 = vand.u32 4294901760, %v2355_v42 }
  0x34   : > { %v515_v15 = vand.u32 4294901760, %v2383_v63  ;;  %v537_v46 = vand.u32 4294901760, %v2410_v38 }
  0x35   : > { %v494_v60 = vsub.f32 %v2355_v42, %v493_v50 }
  0x36   : > { %441 = vmatmul.mubr.f32.gmra.mxu0 %v440_v9  ;;  %665 = vmatmul.mubr.f32.gmra.mxu1 %v2249_v32  ;;  %v320_v9 = vsel %vm276_vm0, %v272_v0, 0  ;;  %v516_v28 = vsub.f32 %v2383_v63, %v515_v15  ;;  %v538_v54 = vsub.f32 %v2410_v38, %v537_v46 }
  0x37   : > { %446 = vmatprep.mubr.f32.mxu0 %v3095_v4  ;;  %670 = vmatprep.mubr.f32.mxu1 %v3095_v4  ;;  %v495_v10 = vand.u32 4294901760, %v494_v60  ;;  %v2402_v17 = vand.u32 4294901760, %v320_v9 }
  0x38   : > { %v517_v43 = vand.u32 4294901760, %v516_v28  ;;  %v539_v60 = vand.u32 4294901760, %v538_v54 }
  0x3a   : > { %452 = vmatmul.mubr.f32.gmra.mxu0 %v451_v20  ;;  %672 = vmatmul.mubr.f32.gmra.mxu1 %v2255_v37  ;;  %v506_v20 = vand.u32 4294901760, %v505_v13 }
  0x3b   : > { %457 = vmatprep.mubr.f32.mxu0 %v3095_v4  ;;  %677 = vmatprep.mubr.f32.mxu1 %v3095_v4 }
  0x3e   : > { %463 = vmatmul.mubr.f32.gmra.mxu0 %v462_v35  ;;  %679 = vmatmul.mubr.f32.gmra.mxu1 %v2280_v53  ;;  %v526_v35 = vand.u32 4294901760, %v2390_v2 }
  0x3f   : > { %468 = vmatprep.mubr.f32.mxu0 %v3095_v4  ;;  %684 = vmatprep.mubr.f32.mxu1 %v3095_v4 }
  0x40   : > { %v527_v44 = vsub.f32 %v2390_v2, %v526_v35 }
  0x42   : > { %474 = vmatmul.mubr.f32.gmra.mxu0 %v473_v47  ;;  %686 = vmatmul.mubr.f32.gmra.mxu1 %v2286_v55  ;;  %v2420_v47 = vsub.f32 %v320_v9, %v2402_v17  ;;  %v528_v49 = vand.u32 4294901760, %v527_v44 }
  0x43   : > { %479 = vmatprep.mubr.f32.mxu0 %v3095_v4  ;;  %691 = vmatprep.mubr.f32.mxu1 %v3095_v4 }
  0x46   : > { %485 = vmatmul.mubr.f32.gmra.mxu0 %v484_v57  ;;  %693 = vmatmul.mubr.f32.gmra.mxu1 %v2313_v8  ;;  %v548_v57 = vand.u32 4294901760, %v2420_v47 }
  0x47   : > { %490 = vmatprep.mubr.f32.mxu0 %v3095_v4  ;;  %698 = vmatprep.mubr.f32.mxu1 %v3095_v4 }
  0x48   : > { %v549_v0 = vsub.f32 %v2420_v47, %v548_v57 }
  0x4a   : > { %496 = vmatmul.mubr.f32.gmra.mxu0 %v495_v10  ;;  %700 = vmatmul.mubr.f32.gmra.mxu1 %v2327_v12  ;;  %v550_v5 = vand.u32 4294901760, %v549_v0 }
  0x4b   : > { %501 = vmatprep.mubr.f32.mxu0 %v3095_v4  ;;  %705 = vmatprep.mubr.f32.mxu1 %v3095_v4 }
  0x4e   : > { %507 = vmatmul.mubr.f32.gmra.mxu0 %v506_v20  ;;  %707 = vmatmul.mubr.f32.gmra.mxu1 %v2342_v27 }
  0x4f   : > { %512 = vmatprep.mubr.f32.mxu0 %v3095_v4  ;;  %712 = vmatprep.mubr.f32.mxu1 %v3095_v4 }
  0x52   : > { %518 = vmatmul.mubr.f32.gmra.mxu0 %v517_v43  ;;  %714 = vmatmul.mubr.f32.gmra.mxu1 %v2347_v29 }
  0x53   : > { %523 = vmatprep.mubr.f32.mxu0 %v3095_v4  ;;  %719 = vmatprep.mubr.f32.mxu1 %v3095_v4 }
  0x56   : > { %529 = vmatmul.mubr.f32.gmra.mxu0 %v528_v49  ;;  %721 = vmatmul.mubr.f32.gmra.mxu1 %v2370_v51 }
  0x57   : > { %534 = vmatprep.mubr.f32.mxu0 %v3095_v4  ;;  %726 = vmatprep.mubr.f32.mxu1 %v3095_v4 }
  0x5a   : > { %540 = vmatmul.mubr.f32.gmra.mxu0 %v539_v60  ;;  %728 = vmatmul.mubr.f32.gmra.mxu1 %v2375_v56 }
  0x5b   : > { %545 = vmatprep.mubr.f32.mxu0 %v3095_v4  ;;  %733 = vmatprep.mubr.f32.mxu1 %v3095_v4 }
  0x5e   : > { %551 = vmatmul.mubr.f32.gmra.mxu0 %v550_v5  ;;  %735 = vmatmul.mubr.f32.gmra.mxu1 %v2398_v16 }
  0x5f   : > { %740 = vmatprep.mubr.f32.mxu1 %v3095_v4  ;;  %823 = vmatprep.mubr.f32.mxu0 %v3095_v4 }
  0x62   : > { %742 = vmatmul.mubr.f32.gmra.mxu1 %v2402_v17  ;;  %826 = vmatmul.mubr.f32.vlgmr.msra.gmra.mxu0 %v2233_v25 }
  0x63   : > { %747 = vmatprep.mubr.f32.mxu1 %v3095_v4  ;;  %831 = vmatprep.mubr.f32.mxu0 %v3095_v4 }
  0x64   : > { %1200 = vmatpush1.msra.mxu0 %v606_v14 }
  0x66   : > { %749 = vmatmul.mubr.f32.gmra.mxu1 %v2224_v19  ;;  %834 = vmatmul.mubr.f32.gmra.mxu0 %v2244_v30 }
  0x67   : > { %839 = vmatprep.mubr.f32.mxu0 %v3095_v4  ;;  %1018 = vmatprep.mubr.f32.mxu1 %v3095_v4 }
  0x6a   : > { %842 = vmatmul.mubr.f32.gmra.mxu0 %v2247_v31  ;;  %1022 = vmatmul.mubr.f32.vlgmr.msra.gmra.mxu1 %v394_v33 }
  0x6b   : > { %847 = vmatprep.mubr.f32.mxu0 %v3095_v4  ;;  %1027 = vmatprep.mubr.f32.mxu1 %v3095_v4 }
  0x6c   : > { %1379 = vmatpush1.msra.mxu1 %v2188_v3 }
  0x6e   : > { %850 = vmatmul.mubr.f32.gmra.mxu0 %v2265_v41  ;;  %1031 = vmatmul.mubr.f32.gmra.mxu1 %v405_v36 }
  0x6f   : > { %855 = vmatprep.mubr.f32.mxu0 %v3095_v4  ;;  %1036 = vmatprep.mubr.f32.mxu1 %v3095_v4 }
  0x72   : > { %858 = vmatmul.mubr.f32.gmra.mxu0 %v2273_v48  ;;  %1040 = vmatmul.mubr.f32.gmra.mxu1 %v416_v40 }
  0x73   : > { %863 = vmatprep.mubr.f32.mxu0 %v3095_v4  ;;  %1045 = vmatprep.mubr.f32.mxu1 %v3095_v4 }
  0x76   : > { %866 = vmatmul.mubr.f32.gmra.mxu0 %v2295_v59  ;;  %1049 = vmatmul.mubr.f32.gmra.mxu1 %v427_v52 }
  0x77   : > { %871 = vmatprep.mubr.f32.mxu0 %v3095_v4  ;;  %1054 = vmatprep.mubr.f32.mxu1 %v3095_v4 }
  0x7a   : > { %874 = vmatmul.mubr.f32.gmra.mxu0 %v2305_v62  ;;  %1058 = vmatmul.mubr.f32.gmra.mxu1 %v438_v58 }
  0x7b   : > { %879 = vmatprep.mubr.f32.mxu0 %v3095_v4  ;;  %1063 = vmatprep.mubr.f32.mxu1 %v3095_v4 }
  0x7e   : > { %882 = vmatmul.mubr.f32.gmra.mxu0 %v2325_v11  ;;  %1067 = vmatmul.mubr.f32.gmra.mxu1 %v449_v1 }
  0x7f   : > { %887 = vmatprep.mubr.f32.mxu0 %v3095_v4  ;;  %1072 = vmatprep.mubr.f32.mxu1 %v3095_v4 }
  0x82   : > { %890 = vmatmul.mubr.f32.gmra.mxu0 %v2340_v22  ;;  %1076 = vmatmul.mubr.f32.gmra.mxu1 %v460_v7 }
  0x83   : > { %895 = vmatprep.mubr.f32.mxu0 %v3095_v4  ;;  %1081 = vmatprep.mubr.f32.mxu1 %v3095_v4 }
  0x86   : > { %898 = vmatmul.mubr.f32.gmra.mxu0 %v2355_v42  ;;  %1085 = vmatmul.mubr.f32.gmra.mxu1 %v471_v21 }
  0x87   : > { %903 = vmatprep.mubr.f32.mxu0 %v3095_v4  ;;  %1090 = vmatprep.mubr.f32.mxu1 %v3095_v4 }
  0x8a   : > { %906 = vmatmul.mubr.f32.gmra.mxu0 %v2362_v45  ;;  %1094 = vmatmul.mubr.f32.gmra.mxu1 %v482_v39 }
  0x8b   : > { %911 = vmatprep.mubr.f32.mxu0 %v3095_v4  ;;  %1099 = vmatprep.mubr.f32.mxu1 %v3095_v4 }
  0x8e   : > { %914 = vmatmul.mubr.f32.gmra.mxu0 %v2383_v63  ;;  %1103 = vmatmul.mubr.f32.gmra.mxu1 %v493_v50 }
  0x8f   : > { %919 = vmatprep.mubr.f32.mxu0 %v3095_v4  ;;  %1108 = vmatprep.mubr.f32.mxu1 %v3095_v4 }
  0x92   : > { %922 = vmatmul.mubr.f32.gmra.mxu0 %v2390_v2  ;;  %1112 = vmatmul.mubr.f32.gmra.mxu1 %v504_v61 }
  0x93   : > { %927 = vmatprep.mubr.f32.mxu0 %v3095_v4  ;;  %1117 = vmatprep.mubr.f32.mxu1 %v3095_v4 }
  0x96   : > { %930 = vmatmul.mubr.f32.gmra.mxu0 %v2410_v38  ;;  %1121 = vmatmul.mubr.f32.gmra.mxu1 %v515_v15 }
  0x97   : > { %935 = vmatprep.mubr.f32.mxu0 %v3095_v4  ;;  %1126 = vmatprep.mubr.f32.mxu1 %v3095_v4 }
  0x9a   : > { %938 = vmatmul.mubr.f32.gmra.mxu0 %v2420_v47  ;;  %1130 = vmatmul.mubr.f32.gmra.mxu1 %v526_v35 }
  0x9b   : > { %943 = vmatprep.mubr.f32.mxu0 %v3095_v4  ;;  %1135 = vmatprep.mubr.f32.mxu1 %v3095_v4 }
  0x9e   : > { %946 = vmatmul.mubr.f32.gmra.mxu0 %v2236_v26  ;;  %1139 = vmatmul.mubr.f32.gmra.mxu1 %v537_v46 }
  0x9f   : > { %1144 = vmatprep.mubr.f32.mxu1 %v3095_v4  ;;  %1233 = vmatprep.mubr.f32.mxu0 %v3095_v4 }
  0xa2   : > { %1148 = vmatmul.mubr.f32.gmra.mxu1 %v548_v57  ;;  %1235 = vmatmul.mubr.f32.vlgmr.msra.gmra.mxu0 %v2222_v18 }
  0xa3   : > { %1153 = vmatprep.mubr.f32.mxu1 %v3095_v4  ;;  %1240 = vmatprep.mubr.f32.mxu0 %v3095_v4 }
  0xa6   : > { %1157 = vmatmul.mubr.f32.gmra.mxu1 %v559_v34  ;;  %1242 = vmatmul.mubr.f32.gmra.mxu0 %v2228_v23 }
  0xa7   : > { %1247 = vmatprep.mubr.f32.mxu0 %v3095_v4  ;;  %1412 = vmatprep.mubr.f32.mxu1 %v3095_v4 }
  0xaa   : > { %1249 = vmatmul.mubr.f32.gmra.mxu0 %v2230_v24  ;;  %1414 = vmatmul.mubr.f32.vlgmr.msra.gmra.mxu1 %v2222_v18 }
  0xab   : > { %1254 = vmatprep.mubr.f32.mxu0 %v3095_v4  ;;  %1419 = vmatprep.mubr.f32.mxu1 %v3095_v4 }
  0xae   : > { %1256 = vmatmul.mubr.f32.gmra.mxu0 %v2249_v32  ;;  %1421 = vmatmul.mubr.f32.gmra.mxu1 %v2228_v23 }
  0xaf   : > { %1261 = vmatprep.mubr.f32.mxu0 %v3095_v4  ;;  %1426 = vmatprep.mubr.f32.mxu1 %v3095_v4 }
  0xb2   : > { %1263 = vmatmul.mubr.f32.gmra.mxu0 %v2255_v37  ;;  %1428 = vmatmul.mubr.f32.gmra.mxu1 %v2230_v24 }
  0xb3   : > { %1268 = vmatprep.mubr.f32.mxu0 %v3095_v4  ;;  %1433 = vmatprep.mubr.f32.mxu1 %v3095_v4 }
  0xb6   : > { %1270 = vmatmul.mubr.f32.gmra.mxu0 %v2280_v53  ;;  %1435 = vmatmul.mubr.f32.gmra.mxu1 %v2249_v32 }
  0xb7   : > { %1275 = vmatprep.mubr.f32.mxu0 %v3095_v4  ;;  %1440 = vmatprep.mubr.f32.mxu1 %v3095_v4 }
  0xba   : > { %1277 = vmatmul.mubr.f32.gmra.mxu0 %v2286_v55  ;;  %1442 = vmatmul.mubr.f32.gmra.mxu1 %v2255_v37 }
  0xbb   : > { %1282 = vmatprep.mubr.f32.mxu0 %v3095_v4  ;;  %1447 = vmatprep.mubr.f32.mxu1 %v3095_v4 }
  0xbe   : > { %1284 = vmatmul.mubr.f32.gmra.mxu0 %v2313_v8  ;;  %1449 = vmatmul.mubr.f32.gmra.mxu1 %v2280_v53 }
  0xbf   : > { %1289 = vmatprep.mubr.f32.mxu0 %v3095_v4  ;;  %1454 = vmatprep.mubr.f32.mxu1 %v3095_v4 }
  0xc2   : > { %1291 = vmatmul.mubr.f32.gmra.mxu0 %v2327_v12  ;;  %1456 = vmatmul.mubr.f32.gmra.mxu1 %v2286_v55 }
  0xc3   : > { %1296 = vmatprep.mubr.f32.mxu0 %v3095_v4  ;;  %1461 = vmatprep.mubr.f32.mxu1 %v3095_v4 }
  0xc6   : > { %1298 = vmatmul.mubr.f32.gmra.mxu0 %v2342_v27  ;;  %1463 = vmatmul.mubr.f32.gmra.mxu1 %v2313_v8 }
  0xc7   : > { %1303 = vmatprep.mubr.f32.mxu0 %v3095_v4  ;;  %1468 = vmatprep.mubr.f32.mxu1 %v3095_v4 }
  0xca   : > { %1305 = vmatmul.mubr.f32.gmra.mxu0 %v2347_v29  ;;  %1470 = vmatmul.mubr.f32.gmra.mxu1 %v2327_v12 }
  0xcb   : > { %1310 = vmatprep.mubr.f32.mxu0 %v3095_v4  ;;  %1475 = vmatprep.mubr.f32.mxu1 %v3095_v4 }
  0xce   : > { %1312 = vmatmul.mubr.f32.gmra.mxu0 %v2370_v51  ;;  %1477 = vmatmul.mubr.f32.gmra.mxu1 %v2342_v27 }
  0xcf   : > { %1317 = vmatprep.mubr.f32.mxu0 %v3095_v4  ;;  %1482 = vmatprep.mubr.f32.mxu1 %v3095_v4 }
  0xd2   : > { %1319 = vmatmul.mubr.f32.gmra.mxu0 %v2375_v56  ;;  %1484 = vmatmul.mubr.f32.gmra.mxu1 %v2347_v29 }
  0xd3   : > { %1324 = vmatprep.mubr.f32.mxu0 %v3095_v4  ;;  %1489 = vmatprep.mubr.f32.mxu1 %v3095_v4 }
  0xd6   : > { %1326 = vmatmul.mubr.f32.gmra.mxu0 %v2398_v16  ;;  %1491 = vmatmul.mubr.f32.gmra.mxu1 %v2370_v51 }
  0xd7   : > { %1331 = vmatprep.mubr.f32.mxu0 %v3095_v4  ;;  %1496 = vmatprep.mubr.f32.mxu1 %v3095_v4 }
  0xda   : > { %1333 = vmatmul.mubr.f32.gmra.mxu0 %v2402_v17  ;;  %1498 = vmatmul.mubr.f32.gmra.mxu1 %v2375_v56 }
  0xdb   : > { %1338 = vmatprep.mubr.f32.mxu0 %v3095_v4  ;;  %1503 = vmatprep.mubr.f32.mxu1 %v3095_v4 }
  0xde   : > { %1340 = vmatmul.mubr.f32.gmra.mxu0 %v2224_v19  ;;  %1505 = vmatmul.mubr.f32.gmra.mxu1 %v2398_v16 }
  0xdf   : > { %1510 = vmatprep.mubr.f32.mxu1 %v3095_v4 }
  0xe2   : > { %1512 = vmatmul.mubr.f32.gmra.mxu1 %v2402_v17 }
  0xe3   : > { %1517 = vmatprep.mubr.f32.mxu1 %v3095_v4 }
  0xe6   : > { %v398_v3 = vpop.f32.mrf.mxu0  ;;  %v2591_v6 = vpop.f32.mrf.mxu1  ;;  %1519 = vmatmul.mubr.f32.gmra.mxu1 %v2224_v19 }
  0xe8   : > { %v400_v14 = vpop.f32.mrf.mxu0  ;;  %v2594_v18 = vpop.f32.mrf.mxu1 }
  0xea   : > { %v409_v23 = vpop.f32.mrf.mxu0  ;;  %v645_v24 = vpop.f32.mrf.mxu1 }
  0xeb   : > { %v2596_v25 = vadd.f32 %v645_v24, %v398_v3 }
  0xec   : > { %v411_v26 = vpop.f32.mrf.mxu0  ;;  %v647_v30 = vpop.f32.mrf.mxu1 }
  0xed   : > { %v2598_v31 = vadd.f32 %v647_v30, %v400_v14 }
  0xee   : > { %v420_v32 = vpop.f32.mrf.mxu0  ;;  %v652_v33 = vpop.f32.mrf.mxu1 }
  0xef   : > { %v2600_v34 = vadd.f32 %v652_v33, %v409_v23 }
  0xf0   : > { %v422_v36 = vpop.f32.mrf.mxu0  ;;  %v654_v37 = vpop.f32.mrf.mxu1 }
  0xf1   : > { %v2602_v40 = vadd.f32 %v654_v37, %v411_v26 }
  0xf2   : > { %v431_v19 = vpop.f32.mrf.mxu0  ;;  %v659_v41 = vpop.f32.mrf.mxu1 }
  0xf3   : > { %v2604_v48 = vadd.f32 %v659_v41, %v420_v32 }
  0xf4   : > { %v433_v52 = vpop.f32.mrf.mxu0  ;;  %v661_v53 = vpop.f32.mrf.mxu1 }
  0xf5   : > { %v2606_v55 = vadd.f32 %v661_v53, %v422_v36 }
  0xf6   : > { %v442_v58 = vpop.f32.mrf.mxu0  ;;  %v666_v59 = vpop.f32.mrf.mxu1 }
  0xf7   : > { %v2608_v62 = vadd.f32 %v666_v59, %v431_v19 }
  0xf8   : > { %v444_v1 = vpop.f32.mrf.mxu0  ;;  %v668_v8 = vpop.f32.mrf.mxu1 }
  0xf9   : > { %v2610_v7 = vadd.f32 %v668_v8, %v433_v52 }
  0xfa   : > { %v453_v11 = vpop.f32.mrf.mxu0  ;;  %v673_v12 = vpop.f32.mrf.mxu1 }
  0xfb   : > { %v2612_v21 = vadd.f32 %v673_v12, %v442_v58 }
  0xfc   : > { %v455_v22 = vpop.f32.mrf.mxu0  ;;  %v675_v27 = vpop.f32.mrf.mxu1 }
  0xfd   : > { %v2614_v29 = vadd.f32 %v675_v27, %v444_v1 }
  0xfe   : > { %v464_v39 = vpop.f32.mrf.mxu0  ;;  %v680_v42 = vpop.f32.mrf.mxu1 }
  0xff   : > { %v2616_v45 = vadd.f32 %v680_v42, %v453_v11 }
 0x100   : > { %v466_v50 = vpop.f32.mrf.mxu0  ;;  %v682_v51 = vpop.f32.mrf.mxu1 }
 0x101   : > { %v2618_v56 = vadd.f32 %v682_v51, %v455_v22 }
 0x102   : > { %v475_v61 = vpop.f32.mrf.mxu0  ;;  %v687_v63 = vpop.f32.mrf.mxu1 }
 0x103   : > { %v2620_v2 = vadd.f32 %v687_v63, %v464_v39 }
 0x104   : > { %v477_v9 = vpop.f32.mrf.mxu0  ;;  %v689_v10 = vpop.f32.mrf.mxu1 }
 0x105   : > { %v2622_v13 = vadd.f32 %v689_v10, %v466_v50 }
 0x106   : > { %v486_v15 = vpop.f32.mrf.mxu0  ;;  %v694_v16 = vpop.f32.mrf.mxu1 }
 0x107   : > { %v2624_v17 = vadd.f32 %v694_v16, %v475_v61 }
 0x108   : > { %v488_v20 = vpop.f32.mrf.mxu0  ;;  %v696_v28 = vpop.f32.mrf.mxu1 }
 0x109   : > { %v2626_v35 = vadd.f32 %v696_v28, %v477_v9 }
 0x10a   : > { %v497_v38 = vpop.f32.mrf.mxu0  ;;  %v701_v43 = vpop.f32.mrf.mxu1 }
 0x10b   : > { %v2628_v44 = vadd.f32 %v701_v43, %v486_v15 }
 0x10c   : > { %v499_v46 = vpop.f32.mrf.mxu0  ;;  %v703_v47 = vpop.f32.mrf.mxu1 }
 0x10d   : > { %v2630_v49 = vadd.f32 %v703_v47, %v488_v20 }
 0x10e   : > { %v508_v54 = vpop.f32.mrf.mxu0  ;;  %v708_v57 = vpop.f32.mrf.mxu1 }
 0x10f   : > { %v2632_v60 = vadd.f32 %v708_v57, %v497_v38 }
 0x110   : > { %v510_v0 = vpop.f32.mrf.mxu0  ;;  %v710_v5 = vpop.f32.mrf.mxu1 }
 0x111   : > { %v2634_v3 = vadd.f32 %v710_v5, %v499_v46 }
 0x112   : > { %v519_v14 = vpop.f32.mrf.mxu0  ;;  %v715_v23 = vpop.f32.mrf.mxu1 }
 0x113   : > { %v2636_v24 = vadd.f32 %v715_v23, %v508_v54 }
 0x114   : > { %v521_v26 = vpop.f32.mrf.mxu0  ;;  %v717_v30 = vpop.f32.mrf.mxu1 }
 0x115   : > { %v2638_v32 = vadd.f32 %v717_v30, %v510_v0 }
 0x116   : > { %v530_v33 = vpop.f32.mrf.mxu0  ;;  %v722_v36 = vpop.f32.mrf.mxu1 }
 0x117   : > { %v2640_v37 = vadd.f32 %v722_v36, %v519_v14 }
 0x118   : > { %v532_v19 = vpop.f32.mrf.mxu0  ;;  %v724_v41 = vpop.f32.mrf.mxu1 }
 0x119   : > { %v2642_v52 = vadd.f32 %v724_v41, %v521_v26 }
 0x11a   : > { %v541_v53 = vpop.f32.mrf.mxu0  ;;  %v729_v58 = vpop.f32.mrf.mxu1 }
 0x11b   : > { %v2644_v59 = vadd.f32 %v729_v58, %v530_v33 }
 0x11c   : > { %v543_v1 = vpop.f32.mrf.mxu0  ;;  %v731_v8 = vpop.f32.mrf.mxu1 }
 0x11d   : > { %v2646_v11 = vadd.f32 %v731_v8, %v532_v19 }
 0x11e   : > { %v552_v12 = vpop.f32.mrf.mxu0  ;;  %v736_v22 = vpop.f32.mrf.mxu1 }
 0x11f   : > { %v2648_v27 = vadd.f32 %v736_v22, %v541_v53 }
 0x120   : > { %v554_v39 = vpop.f32.mrf.mxu0  ;;  %v738_v42 = vpop.f32.mrf.mxu1 }
 0x121   : > { %v2650_v50 = vadd.f32 %v738_v42, %v543_v1 }
 0x122   : > { %v743_v51 = vpop.f32.mrf.mxu1  ;;  %v827_v61 = vpop.f32.mrf.mxu0 }
 0x123   : > { %v2652_v63 = vadd.f32 %v743_v51, %v552_v12  ;;  %v828_v9 = vadd.f32 %v827_v61, %v2596_v25  ;;  %v3097_v51 = vlaneseq }
 0x124   : > { %v745_v10 = vpop.f32.mrf.mxu1  ;;  %v829_v15 = vpop.f32.mrf.mxu0 }
 0x125   : > { %v2655_v16 = vadd.f32 %v745_v10, %v554_v39  ;;  %v830_v20 = vadd.f32 %v829_v15, %v2598_v31  ;;  %vm2688_vm1 = vcmp.lt.s32.totalorder %v3097_v51, 256 }
 0x126   : > { %v750_v28 = vpop.f32.mrf.mxu1  ;;  %v835_v38 = vpop.f32.mrf.mxu0 }
 0x127   : > { %v2659_v43 = vadd.f32 %v750_v28, %v2591_v6  ;;  %v836_v46 = vadd.f32 %v835_v38, %v2600_v34 }
 0x128   : > { %v752_v47 = vpop.f32.mrf.mxu1  ;;  %v837_v54 = vpop.f32.mrf.mxu0 }
 0x129   : > { %v2663_v57 = vadd.f32 %v752_v47, %v2594_v18  ;;  %v838_v25 = vadd.f32 %v837_v54, %v2602_v40 }
 0x12a   : > { %v843_v0 = vpop.f32.mrf.mxu0  ;;  %v1023_v5 = vpop.f32.mrf.mxu1 }
 0x12b   : > { %v844_v14 = vadd.f32 %v843_v0, %v2604_v48  ;;  %v2667_v23 = vadd.f32 %v1023_v5, %v828_v9 }
 0x12c   : > { %v845_v31 = vpop.f32.mrf.mxu0  ;;  %v1025_v26 = vpop.f32.mrf.mxu1 }
 0x12d   : > { %v846_v6 = vadd.f32 %v845_v31, %v2606_v55  ;;  %v2670_v30 = vadd.f32 %v1025_v26, %v830_v20 }
 0x12e   : > { %v851_v34 = vpop.f32.mrf.mxu0  ;;  %v1032_v33 = vpop.f32.mrf.mxu1 }
 0x12f   : > { %v852_v36 = vadd.f32 %v851_v34, %v2608_v62  ;;  %v2673_v18 = vadd.f32 %v1032_v33, %v836_v46 }
 0x130   : > { %v853_v19 = vpop.f32.mrf.mxu0  ;;  %v1034_v40 = vpop.f32.mrf.mxu1 }
 0x131   : > { %v854_v41 = vadd.f32 %v853_v19, %v2610_v7  ;;  %v2676_v53 = vadd.f32 %v1034_v40, %v838_v25 }
 0x132   : > { %v859_v48 = vpop.f32.mrf.mxu0  ;;  %v1041_v58 = vpop.f32.mrf.mxu1 }
 0x133   : > { %v860_v1 = vadd.f32 %v859_v48, %v2612_v21  ;;  %v2679_v8 = vadd.f32 %v1041_v58, %v844_v14  ;;  %v3102_v21 = vmov 0 }
 0x134   : > { %v861_v55 = vpop.f32.mrf.mxu0  ;;  %v1043_v12 = vpop.f32.mrf.mxu1  ;;  %v3103_v21 = vsel %vm2688_vm1, 4294967295, %v3102_v21 }
 0x135   : > { %v862_v22 = vadd.f32 %v861_v55, %v2614_v29  ;;  %v2682_v39 = vadd.f32 %v1043_v12, %v846_v6  ;;  %3104 = vst [vmem:[#allocation7_spill] sm:$0xff] %v3103_v21  ;;  %v2099_v29 = vmov 1e+30  }
 0x136   : > { %v867_v62 = vpop.f32.mrf.mxu0  ;;  %v1050_v42 = vpop.f32.mrf.mxu1  ;;  %255 = vst.msk [vmem:[#allocation2] sm:$0x3] %vm2688_vm1, %v2099_v29 }
 0x137   : > { %v868_v61 = vadd.f32 %v867_v62, %v2616_v45  ;;  %v2685_v7 = vadd.f32 %v1050_v42, %v852_v36 }
 0x138   : > { %v869_v9 = vpop.f32.mrf.mxu0  ;;  %v1052_v10 = vpop.f32.mrf.mxu1 }
 0x139   : > { %v870_v15 = vadd.f32 %v869_v9, %v2618_v56  ;;  %v2693_v20 = vadd.f32 %v1052_v10, %v854_v41 }
 0x13a   : > { %v875_v28 = vpop.f32.mrf.mxu0  ;;  %v1059_v38 = vpop.f32.mrf.mxu1 }
 0x13b   : > { %v876_v45 = vadd.f32 %v875_v28, %v2620_v2  ;;  %v2698_v46 = vadd.f32 %v1059_v38, %v860_v1 }
 0x13c   : > { %v877_v47 = vpop.f32.mrf.mxu0  ;;  %v1061_v54 = vpop.f32.mrf.mxu1 }
 0x13d   : > { %v878_v25 = vadd.f32 %v877_v47, %v2622_v13  ;;  %v2701_v0 = vadd.f32 %v1061_v54, %v862_v22 }
 0x13e   : > { %v883_v5 = vpop.f32.mrf.mxu0  ;;  %v1068_v56 = vpop.f32.mrf.mxu1 }
 0x13f   : > { %v884_v14 = vadd.f32 %v883_v5, %v2624_v17  ;;  %v2704_v31 = vadd.f32 %v1068_v56, %v868_v61 }
 0x140   : > { %v885_v26 = vpop.f32.mrf.mxu0  ;;  %v1070_v6 = vpop.f32.mrf.mxu1 }
 0x141   : > { %v886_v34 = vadd.f32 %v885_v26, %v2626_v35  ;;  %v2707_v33 = vadd.f32 %v1070_v6, %v870_v15 }
 0x142   : > { %v891_v2 = vpop.f32.mrf.mxu0  ;;  %v1077_v36 = vpop.f32.mrf.mxu1 }
 0x143   : > { %v892_v19 = vadd.f32 %v891_v2, %v2628_v44  ;;  %v2710_v40 = vadd.f32 %v1077_v36, %v876_v45 }
 0x144   : > { %v893_v13 = vpop.f32.mrf.mxu0  ;;  %v1079_v41 = vpop.f32.mrf.mxu1 }
 0x145   : > { %v894_v48 = vadd.f32 %v893_v13, %v2630_v49  ;;  %v2713_v58 = vadd.f32 %v1079_v41, %v878_v25 }
 0x146   : > { %v899_v17 = vpop.f32.mrf.mxu0  ;;  %v1086_v1 = vpop.f32.mrf.mxu1 }
 0x147   : > { %v900_v55 = vadd.f32 %v899_v17, %v2632_v60  ;;  %v2716_v12 = vadd.f32 %v1086_v1, %v884_v14 }
 0x148   : > { %v901_v35 = vpop.f32.mrf.mxu0  ;;  %v1088_v22 = vpop.f32.mrf.mxu1 }
 0x149   : > { %v902_v62 = vadd.f32 %v901_v35, %v2634_v3  ;;  %v2719_v42 = vadd.f32 %v1088_v22, %v886_v34 }
 0x14a   : > { %v907_v44 = vpop.f32.mrf.mxu0  ;;  %v1095_v61 = vpop.f32.mrf.mxu1 }
 0x14b   : > { %v908_v9 = vadd.f32 %v907_v44, %v2636_v24  ;;  %v2722_v10 = vadd.f32 %v1095_v61, %v892_v19 }
 0x14c   : > { %v909_v49 = vpop.f32.mrf.mxu0  ;;  %v1097_v15 = vpop.f32.mrf.mxu1 }
 0x14d   : > { %v910_v29 = vadd.f32 %v909_v49, %v2638_v32  ;;  %v2725_v28 = vadd.f32 %v1097_v15, %v894_v48 }
 0x14e   : > { %v915_v60 = vpop.f32.mrf.mxu0  ;;  %v1104_v38 = vpop.f32.mrf.mxu1 }
 0x14f   : > { %v916_v45 = vadd.f32 %v915_v60, %v2640_v37  ;;  %v2728_v47 = vadd.f32 %v1104_v38, %v900_v55 }
 0x150   : > { %v917_v3 = vpop.f32.mrf.mxu0  ;;  %v1106_v54 = vpop.f32.mrf.mxu1 }
 0x151   : > { %v918_v25 = vadd.f32 %v917_v3, %v2642_v52  ;;  %v2731_v5 = vadd.f32 %v1106_v54, %v902_v62 }
 0x152   : > { %v923_v24 = vpop.f32.mrf.mxu0  ;;  %v1113_v56 = vpop.f32.mrf.mxu1 }
 0x153   : > { %v924_v14 = vadd.f32 %v923_v24, %v2644_v59  ;;  %v2734_v26 = vadd.f32 %v1113_v56, %v908_v9 }
 0x154   : > { %v925_v32 = vpop.f32.mrf.mxu0  ;;  %v1115_v6 = vpop.f32.mrf.mxu1 }
 0x155   : > { %v926_v34 = vadd.f32 %v925_v32, %v2646_v11  ;;  %v2737_v2 = vadd.f32 %v1115_v6, %v910_v29 }
 0x156   : > { %v931_v37 = vpop.f32.mrf.mxu0  ;;  %v1122_v36 = vpop.f32.mrf.mxu1 }
 0x157   : > { %v932_v19 = vadd.f32 %v931_v37, %v2648_v27  ;;  %v2740_v13 = vadd.f32 %v1122_v36, %v916_v45 }
 0x158   : > { %v933_v52 = vpop.f32.mrf.mxu0  ;;  %v1124_v41 = vpop.f32.mrf.mxu1 }
 0x159   : > { %v934_v48 = vadd.f32 %v933_v52, %v2650_v50  ;;  %v2743_v17 = vadd.f32 %v1124_v41, %v918_v25  ;;  %v2100_v25 = vmov 0  }
 0x15a   : > { %v939_v59 = vpop.f32.mrf.mxu0  ;;  %v1131_v1 = vpop.f32.mrf.mxu1  ;;  %1729 = vmatprep.mubr.bf16.mxu0 %v2100_v25 }
 0x15b   : > { %v940_v55 = vadd.f32 %v939_v59, %v2652_v63  ;;  %v2746_v35 = vadd.f32 %v1131_v1, %v924_v14 }
 0x15c   : > { %v941_v11 = vpop.f32.mrf.mxu0  ;;  %v1133_v22 = vpop.f32.mrf.mxu1 }
 0x15d   : > { %v942_v62 = vadd.f32 %v941_v11, %v2655_v16  ;;  %v2749_v44 = vadd.f32 %v1133_v22, %v926_v34 }
 0x15e   : > { %v2751_v27 = vpop.f32.mrf.mxu0  ;;  %v1140_v61 = vpop.f32.mrf.mxu1 }
 0x15f   : > { %v2753_v9 = vadd.f32 %v1140_v61, %v932_v19 }
 0x160   : > { %v2755_v50 = vpop.f32.mrf.mxu0  ;;  %v1142_v49 = vpop.f32.mrf.mxu1 }
 0x161   : > { %v2757_v15 = vadd.f32 %v1142_v49, %v934_v48 }
 0x162   : > { %v1149_v29 = vpop.f32.mrf.mxu1  ;;  %v1236_v63 = vpop.f32.mrf.mxu0 }
 0x163   : > { %v2759_v60 = vadd.f32 %v1149_v29, %v940_v55 }
 0x164   : > { %v1151_v38 = vpop.f32.mrf.mxu1  ;;  %v1238_v45 = vpop.f32.mrf.mxu0 }
 0x165   : > { %v2761_v3 = vadd.f32 %v1151_v38, %v942_v62  ;;  %v1239_v49 = vadd.f32 %v1238_v45, %v2670_v30 }
 0x166   : > { %v2763_v16 = vpop.f32.mrf.mxu1  ;;  %v1243_v54 = vpop.f32.mrf.mxu0 }
 0x167   : > { %3105 = vst [vmem:[#allocation8_spill] sm:$0xff] %v2761_v3  ;;  %3106 = vst [vmem:[#allocation9_spill] sm:$0xff] %v2763_v16  ;;  %v1237_v3 = vadd.f32 %v1236_v63, %v2667_v23 }
 0x168   : > { %v2765_v24 = vpop.f32.mrf.mxu1  ;;  %v1245_v56 = vpop.f32.mrf.mxu0 }
 0x169   : > { %3107 = vst [vmem:[#allocation10_spill] sm:$0xff] %v2765_v24  ;;  %v1246_v45 = vadd.f32 %v1245_v56, %v2676_v53  ;;  %v1244_v56 = vadd.f32 %v1243_v54, %v2673_v18 }
 0x16a   : > { %v1250_v14 = vpop.f32.mrf.mxu0  ;;  %v1415_v32 = vpop.f32.mrf.mxu1 }
 0x16b   : > { %v1251_v38 = vadd.f32 %v1250_v14, %v2679_v8 }
 0x16c   : > { %v1252_v6 = vpop.f32.mrf.mxu0  ;;  %v1417_v34 = vpop.f32.mrf.mxu1 }
 0x16d   : > { %v1253_v22 = vadd.f32 %v1252_v6, %v2682_v39  ;;  %v2772_v51 = vadd.f32 %v1417_v34, %v1239_v49 }
 0x16e   : > { %v1257_v37 = vpop.f32.mrf.mxu0  ;;  %v1422_v36 = vpop.f32.mrf.mxu1 }
 0x170   : > { %v1259_v19 = vpop.f32.mrf.mxu0  ;;  %v1424_v52 = vpop.f32.mrf.mxu1 }
 0x171   : > { %v1260_v21 = vadd.f32 %v1259_v19, %v2693_v20  ;;  %v2787_v20 = vadd.f32 %v1415_v32, %v1237_v3  ;;  %v2792_v19 = vadd.f32 %v1424_v52, %v1246_v45 }
 0x172   : > { %v1264_v41 = vpop.f32.mrf.mxu0  ;;  %v1429_v48 = vpop.f32.mrf.mxu1 }
 0x173   : > { %v1265_v39 = vadd.f32 %v1264_v41, %v2698_v46  ;;  %v2778_v6 = vadd.f32 %v1429_v48, %v1251_v38  ;;  %v1258_v46 = vadd.f32 %v1257_v37, %v2685_v7 }
 0x174   : > { %v1266_v59 = vpop.f32.mrf.mxu0  ;;  %v1431_v1 = vpop.f32.mrf.mxu1 }
 0x175   : > { %v2769_v29 = vadd.f32 %v1431_v1, %v1253_v22  ;;  %v1267_v24 = vadd.f32 %v1266_v59, %v2701_v0 }
 0x176   : > { %v1271_v55 = vpop.f32.mrf.mxu0  ;;  %v1436_v11 = vpop.f32.mrf.mxu1 }
 0x177   : > { %v1547_v8 = vmin.f32 %v2772_v51, %v2769_v29  ;;  %v1272_v3 = vadd.f32 %v1271_v55, %v2704_v31  ;;  %v2800_v32 = vadd.f32 %v1436_v11, %v1258_v46 }
 0x178   : > { %v1273_v62 = vpop.f32.mrf.mxu0  ;;  %v1438_v61 = vpop.f32.mrf.mxu1 }
 0x179   : > { %v2783_v14 = vadd.f32 %v1438_v61, %v1260_v21  ;;  %v1274_v41 = vadd.f32 %v1273_v62, %v2707_v33  ;;  %v1526_v21 = vmin.f32 %v2787_v20, %v2778_v6  ;;  %v2807_v33 = vadd.f32 %v1422_v36, %v1244_v56 }
 0x17a   : > { %v1278_v25 = vpop.f32.mrf.mxu0  ;;  %v1443_v4 = vpop.f32.mrf.mxu1 }
 0x17b   : > { %v2789_v0 = vadd.f32 %v1443_v4, %v1265_v39  ;;  %v1548_v7 = vmin.f32 %v2792_v19, %v2783_v14  ;;  %v1279_v37 = vadd.f32 %v1278_v25, %v2710_v40  ;;  %v1527_v40 = vmin.f32 %v2807_v33, %v2800_v32 }
 0x17c   : > { %v1280_v16 = vpop.f32.mrf.mxu0  ;;  %v1445_v30 = vpop.f32.mrf.mxu1 }
 0x17d   : > { %v2785_v34 = vadd.f32 %v1445_v30, %v1267_v24  ;;  %v1528_v18 = vmin.f32 %v1526_v21, %v2789_v0  ;;  %v1281_v59 = vadd.f32 %v1280_v16, %v2713_v58 }
 0x17e   : > { %v1285_v23 = vpop.f32.mrf.mxu0  ;;  %v1450_v63 = vpop.f32.mrf.mxu1 }
 0x17f   : > { %v1549_v53 = vmin.f32 %v1547_v8, %v2785_v34  ;;  %v2811_v31 = vadd.f32 %v1450_v63, %v1272_v3  ;;  %v1286_v36 = vadd.f32 %v1285_v23, %v2716_v12 }
 0x180   : > { %v1287_v24 = vpop.f32.mrf.mxu0  ;;  %v1452_v4 = vpop.f32.mrf.mxu1 }
 0x181   : > { %v2805_v52 = vadd.f32 %v1452_v4, %v1274_v41  ;;  %v1529_v58 = vmin.f32 %v1527_v40, %v2811_v31  ;;  %v1288_v16 = vadd.f32 %v1287_v24, %v2719_v42 }
 0x182   : > { %v1292_v54 = vpop.f32.mrf.mxu0  ;;  %v1457_v48 = vpop.f32.mrf.mxu1 }
 0x183   : > { %v1550_v1 = vmin.f32 %v1548_v7, %v2805_v52  ;;  %v2814_v55 = vadd.f32 %v1457_v48, %v1279_v37  ;;  %v1293_v8 = vadd.f32 %v1292_v54, %v2722_v10 }
 0x184   : > { %v1294_v11 = vpop.f32.mrf.mxu0  ;;  %v1459_v22 = vpop.f32.mrf.mxu1 }
 0x185   : > { %v1530_v62 = vmin.f32 %v1528_v18, %v2814_v55  ;;  %v2820_v61 = vadd.f32 %v1459_v22, %v1281_v59  ;;  %v1295_v41 = vadd.f32 %v1294_v11, %v2725_v28 }
 0x186   : > { %v1299_v49 = vpop.f32.mrf.mxu0  ;;  %v1464_v38 = vpop.f32.mrf.mxu1 }
 0x187   : > { %v1551_v25 = vmin.f32 %v1549_v53, %v2820_v61  ;;  %v2825_v39 = vadd.f32 %v1464_v38, %v1286_v36  ;;  %v1300_v3 = vadd.f32 %v1299_v49, %v2728_v47 }
 0x188   : > { %v1301_v30 = vpop.f32.mrf.mxu0  ;;  %v1466_v45 = vpop.f32.mrf.mxu1 }
 0x189   : > { %v1531_v12 = vmin.f32 %v1529_v58, %v2825_v39  ;;  %v2829_v23 = vadd.f32 %v1466_v45, %v1288_v16  ;;  %v1302_v37 = vadd.f32 %v1301_v30, %v2731_v5 }
 0x18a   : > { %v1306_v63 = vpop.f32.mrf.mxu0  ;;  %v1471_v46 = vpop.f32.mrf.mxu1 }
 0x18b   : > { %v1552_v56 = vmin.f32 %v1550_v1, %v2829_v23  ;;  %v2833_v21 = vadd.f32 %v1471_v46, %v1293_v8  ;;  %v1307_v59 = vadd.f32 %v1306_v63, %v2734_v26 }
 0x18c   : > { %v1308_v42 = vpop.f32.mrf.mxu0  ;;  %v1473_v53 = vpop.f32.mrf.mxu1 }
 0x18d   : > { %v1532_v24 = vmin.f32 %v1530_v62, %v2833_v21  ;;  %v2837_v4 = vadd.f32 %v1473_v53, %v1295_v41  ;;  %v1309_v40 = vadd.f32 %v1308_v42, %v2737_v2 }
 0x18e   : > { %v1313_v10 = vpop.f32.mrf.mxu0  ;;  %v1478_v7 = vpop.f32.mrf.mxu1 }
 0x18f   : > { %v1553_v18 = vmin.f32 %v1551_v25, %v2837_v4  ;;  %v2841_v54 = vadd.f32 %v1478_v7, %v1300_v3  ;;  %v1314_v38 = vadd.f32 %v1313_v10, %v2740_v13 }
 0x190   : > { %v1315_v28 = vpop.f32.mrf.mxu0  ;;  %v1480_v48 = vpop.f32.mrf.mxu1 }
 0x191   : > { %v1533_v1 = vmin.f32 %v1531_v12, %v2841_v54  ;;  %v2845_v11 = vadd.f32 %v1480_v48, %v1302_v37  ;;  %v1316_v30 = vadd.f32 %v1315_v28, %v2743_v17 }
 0x192   : > { %v1320_v47 = vpop.f32.mrf.mxu0  ;;  %v1485_v22 = vpop.f32.mrf.mxu1 }
 0x193   : > { %v1554_v36 = vmin.f32 %v1552_v56, %v2845_v11  ;;  %v2849_v62 = vadd.f32 %v1485_v22, %v1307_v59  ;;  %v1321_v63 = vadd.f32 %v1320_v47, %v2746_v35 }
 0x194   : > { %v1322_v5 = vpop.f32.mrf.mxu0  ;;  %v1487_v49 = vpop.f32.mrf.mxu1 }
 0x195   : > { %v1534_v58 = vmin.f32 %v1532_v24, %v2849_v62  ;;  %v2853_v16 = vadd.f32 %v1487_v49, %v1309_v40  ;;  %v1323_v42 = vadd.f32 %v1322_v5, %v2749_v44  ;;  %v950_v40 = vadd.f32 %v2755_v50, %v2663_v57  ;;  %v3109_v49 = vld [vmem:[#allocation8_spill] sm:$0xff] }
 0x196   : > { %v1327_v26 = vpop.f32.mrf.mxu0  ;;  %v1492_v25 = vpop.f32.mrf.mxu1 }
 0x197   : > { %v1555_v45 = vmin.f32 %v1553_v18, %v2853_v16  ;;  %v2857_v8 = vadd.f32 %v1492_v25, %v1314_v38  ;;  %v1328_v10 = vadd.f32 %v1327_v26, %v2753_v9 }
 0x198   : > { %v1329_v2 = vpop.f32.mrf.mxu0  ;;  %v1494_v12 = vpop.f32.mrf.mxu1 }
 0x199   : > { %v1535_v46 = vmin.f32 %v1533_v1, %v2857_v8  ;;  %v2861_v41 = vadd.f32 %v1494_v12, %v1316_v30  ;;  %v1330_v18 = vadd.f32 %v1329_v2, %v2757_v15  ;;  %v948_v1 = vadd.f32 %v2751_v27, %v2659_v43  ;;  %v3108_v15 = vld [vmem:[#allocation9_spill] sm:$0xff]  ;;  %v3110_v43 = vld [vmem:[#allocation10_spill] sm:$0xff] }
 0x19a   : > { %v1334_v13 = vpop.f32.mrf.mxu0  ;;  %v1499_v56 = vpop.f32.mrf.mxu1  ;;  %v1161_v27 = vadd.f32 %v3110_v43, %v950_v40  ;;  %v2888_v43 = vld [vmem:[#allocation2] sm:$0x3] }
 0x19b   : > { %v1556_v53 = vmin.f32 %v1554_v36, %v2861_v41  ;;  %v2865_v3 = vadd.f32 %v1499_v56, %v1321_v63  ;;  %v1335_v47 = vadd.f32 %v1334_v13, %v2759_v60  ;;  %v1159_v5 = vadd.f32 %v3108_v15, %v948_v1 }
 0x19c   : > { %v1336_v17 = vpop.f32.mrf.mxu0  ;;  %v1501_v24 = vpop.f32.mrf.mxu1  ;;  %v2101_v1 = vmov 1966171168  }
 0x19d   : > { %v1536_v7 = vmin.f32 %v1534_v58, %v2865_v3  ;;  %v2869_v37 = vadd.f32 %v1501_v24, %v1323_v42  ;;  %v1337_v38 = vadd.f32 %v1336_v17, %v3109_v49 }
 0x19e   : > { %v1506_v35 = vpop.f32.mrf.mxu1  ;;  %v1341_v44 = vpop.f32.mrf.mxu0 }
 0x19f   : > { %v1557_v28 = vmin.f32 %v1555_v45, %v2869_v37  ;;  %v2873_v48 = vadd.f32 %v1506_v35, %v1328_v10  ;;  %v1342_v60 = vadd.f32 %v1341_v44, %v1159_v5 }
 0x1a0   : > { %v1508_v59 = vpop.f32.mrf.mxu1  ;;  %v1343_v25 = vpop.f32.mrf.mxu0 }
 0x1a1   : > { %v1537_v9 = vmin.f32 %v1535_v46, %v2873_v48  ;;  %v2879_v22 = vadd.f32 %v1508_v59, %v1330_v18  ;;  %v1344_v63 = vadd.f32 %v1343_v25, %v1161_v27 }
 0x1a2   : > { %v1513_v36 = vpop.f32.mrf.mxu1 }
 0x1a3   : > { %v1558_v58 = vmin.f32 %v1556_v53, %v2879_v22  ;;  %v1514_v26 = vadd.f32 %v1513_v36, %v1335_v47  ;;  %v1572_v47 = vunpack.c.l.s4 %v2101_v1 }
 0x1a4   : > { %v1515_v30 = vpop.f32.mrf.mxu1 }
 0x1a5   : > { %v1538_v45 = vmin.f32 %v1536_v7, %v1514_v26  ;;  %v1516_v2 = vadd.f32 %v1515_v30, %v1337_v38  ;;  %v1573_v15 = vunpack.c.0.s8 %v1572_v47 }
 0x1a6   : > { %v1520_v12 = vpop.f32.mrf.mxu1 }
 0x1a7   : > { %v1559_v46 = vmin.f32 %v1557_v28, %v1516_v2  ;;  %v1521_v13 = vadd.f32 %v1520_v12, %v1342_v60  ;;  %v3111_v28 = vlaneseq }
 0x1a8   : > { %v1522_v57 = vpop.f32.mrf.mxu1 }
 0x1a9   : > { %v1539_v50 = vmin.f32 %v1537_v9, %v1521_v13  ;;  %v1523_v56 = vadd.f32 %v1522_v57, %v1344_v63  ;;  %v1575_v5 = vshrl.u32 %v3111_v28, 7 }
 0x1ab   : > { %v1540_v42 = vmin.f32 %v1538_v45, %v1539_v50  ;;  %v1560_v24 = vmin.f32 %v1558_v58, %v1523_v56  ;;  %v1576_v25 = vsub.s32 %v1573_v15, %v1575_v5  ;;  %v2891_v45 = vsub.s32 0, %v1575_v5 }
 0x1ac   : > { %v2893_v12 = vsub.s32 1, %v1575_v5 }
 0x1ad   : > { %v1541_v17 = vrot.slane %v1540_v42, 4  ;;  %v1561_v10 = vmin.f32 %v1559_v46, %v1560_v24 }
 0x1af   : > { %v1542_v53 = vmin.f32 %v1540_v42, %v1541_v17  ;;  %v1562_v35 = vrot.slane %v1561_v10, 4 }
 0x1b1   : > { %v1543_v18 = vrot.slane %v1542_v53, 2  ;;  %v1563_v59 = vmin.f32 %v1561_v10, %v1562_v35 }
 0x1b3   : > { %v1544_v44 = vmin.f32 %v1542_v53, %v1543_v18  ;;  %v1564_v7 = vrot.slane %v1563_v59, 2 }
 0x1b5   : > { %v1545_v40 = vrot.slane %v1544_v44, 1  ;;  %v1565_v36 = vmin.f32 %v1563_v59, %v1564_v7 }
 0x1b7   : > { %v1566_v49 = vrot.slane %v1565_v36, 1  ;;  %v1546_v9 = vmin.f32 %v1544_v44, %v1545_v40 }
 0x1b9   : > { %v1567_v38 = vmin.f32 %v1565_v36, %v1566_v49 }
 0x1bb   : > { %v1570_v58 = vcombine.low %v1546_v9, %v1567_v38 }
 0x1bd   : > { %v1577_v30 = vrot.slane %v1570_v58, %v1576_v25 }
 0x1bf   : > { %v1584_v27 = vrot.slane %v1577_v30, %v1576_v25 }
 0x1c1   : > { %v1586_v60 = vmin.f32 %v2888_v43, %v1584_v27 }
 0x1c3   : > { %v2895_v63 = vadd.f32 1e-06, %v1586_v60  ;;  %1746 = vst.msk [vmem:[#allocation2] sm:$0x3] %vm2688_vm1, %v1586_v60 }
 0x1c5   : > { %v2901_v57 = vrot.slane %v2895_v63, %v2891_v45  ;;  %v2905_v50 = vrot.slane %v2895_v63, %v2893_v12 }
 0x1c7   : > { %vm1632_vm3 = vcmp.le.f32.partialorder %v1523_v56, %v2905_v50  ;;  %vm1630_vm4 = vcmp.le.f32.partialorder %v1516_v2, %v2905_v50  ;;  %vm1629_vm5 = vcmp.le.f32.partialorder %v1514_v26, %v2901_v57  ;;  %vm1631_vm6 = vcmp.le.f32.partialorder %v1521_v13, %v2901_v57 }
 0x1c8   : > { %vm1916_vm7 = vmpackc.low %vm1632_vm3, %vm1630_vm4  ;;  %vm1626_vm8 = vcmp.le.f32.partialorder %v2869_v37, %v2905_v50  ;;  %vm1628_vm9 = vcmp.le.f32.partialorder %v2879_v22, %v2905_v50  ;;  %vm1625_vm10 = vcmp.le.f32.partialorder %v2865_v3, %v2901_v57  ;;  %vm1627_vm11 = vcmp.le.f32.partialorder %v2873_v48, %v2901_v57 }
 0x1c9   : > { %v2102_v56 = vmov 1.0|1.0   ;;  %vm1918_vm12 = vmpackc.low %vm1631_vm6, %vm1629_vm5  ;;  %vm1622_vm13 = vcmp.le.f32.partialorder %v2853_v16, %v2905_v50  ;;  %vm1624_vm14 = vcmp.le.f32.partialorder %v2861_v41, %v2905_v50  ;;  %vm1621_vm15 = vcmp.le.f32.partialorder %v2849_v62, %v2901_v57 }
 0x1ca   : > { %1917 = vmatprep.subr.msk.bf16.mxu0 %vm1916_vm7, %v2102_v56  ;;  %vm1623_vm0 = vcmp.le.f32.partialorder %v2857_v8, %v2901_v57  ;;  %vm1920_vm3 = vmpackc.low %vm1628_vm9, %vm1626_vm8  ;;  %vm1618_vm4 = vcmp.le.f32.partialorder %v2837_v4, %v2905_v50  ;;  %vm1620_vm5 = vcmp.le.f32.partialorder %v2845_v11, %v2905_v50  ;;  %vm1617_vm6 = vcmp.le.f32.partialorder %v2833_v21, %v2901_v57  ;;  %v1750_v3 = vld [vmem:[#allocation2] sm:$0x3] }
 0x1cb   : > { %1919 = vmatpush1.bf16.msk.msra.mxu0 %vm1918_vm12, %v2102_v56  ;;  %vm1922_vm8 = vmpackc.low %vm1627_vm11, %vm1625_vm10  ;;  %vm1614_vm9 = vcmp.le.f32.partialorder %v2820_v61, %v2905_v50  ;;  %vm1616_vm12 = vcmp.le.f32.partialorder %v2829_v23, %v2905_v50  ;;  %vm1610_vm11 = vcmp.le.f32.partialorder %v2785_v34, %v2905_v50  ;;  %vm1609_vm2 = vcmp.le.f32.partialorder %v2789_v0, %v2901_v57 }
 0x1cc   : > { %1921 = vmatprep.subr.msk.bf16.mxu0 %vm1920_vm3, %v2102_v56  ;;  %vm1924_vm10 = vmpackc.low %vm1624_vm14, %vm1622_vm13  ;;  %vm1608_vm3 = vcmp.le.f32.partialorder %v2783_v14, %v2905_v50  ;;  %vm1751_vm14 = vcmp.le.f32.partialorder %v1750_v3, 1.0  ;;  %v3114_v4 = vmov 0.0  }
 0x1cd   : > { %vm1926_vm13 = vmpackc.low %vm1623_vm0, %vm1621_vm15  ;;  %vm3113_vm15 = vcmp.le.f32.partialorder %v2841_v54, %v2901_v57  ;;  %v1752_v62 = vsel %vm1751_vm14, 1.0, %v3114_v4 }
 0x1ce   : > { %vm1928_vm7 = vmpackc.low %vm1620_vm5, %vm1618_vm4  ;;  %vm3115_vm4 = vcmp.le.f32.partialorder %v2814_v55, %v2901_v57  ;;  %vm3116_vm5 = vcmp.le.f32.partialorder %v2825_v39, %v2901_v57  ;;  %1948 = vst.msk [vmem:[%s3003_s10 + $0x3] ss:$4 sm:$0x3] %vm2688_vm1, %v1752_v62 }
 0x1cf   : > { %1923 = vmatpush1.bf16.msk.msra.mxu0 %vm1922_vm8, %v2102_v56  ;;  %vm1930_vm0 = vmpackc.low %vm3113_vm15, %vm1617_vm6  ;;  %vm3117_vm6 = vcmp.le.f32.partialorder %v2805_v52, %v2905_v50  ;;  %vm3119_vm15 = vcmp.le.f32.partialorder %v2769_v29, %v2905_v50  ;;  %v1696_v29 = vld [vmem:[%s3092_s1] sm:$0xf] }
 0x1d0   : > { %1925 = vmatprep.subr.msk.bf16.mxu0 %vm1924_vm10, %v2102_v56  ;;  %vm1932_vm8 = vmpackc.low %vm1616_vm12, %vm1614_vm9  ;;  %vm3118_vm12 = vcmp.le.f32.partialorder %v2811_v31, %v2901_v57 }
 0x1d1   : > { %vm1934_vm10 = vmpackc.low %vm3116_vm5, %vm3115_vm4 }
 0x1d2   : > { %vm1936_vm9 = vmpackc.low %vm3117_vm6, %vm1610_vm11  ;;  %vm1607_vm11 = vcmp.le.f32.partialorder %v2800_v32, %v2901_v57 }
 0x1d3   : > { %1927 = vmatpush1.bf16.msk.msra.mxu0 %vm1926_vm13, %v2102_v56  ;;  %vm1938_vm14 = vmpackc.low %vm3118_vm12, %vm1609_vm2  ;;  %vm1602_vm2 = vcmp.le.f32.partialorder %v2772_v51, %v2905_v50  ;;  %vm1604_vm13 = vcmp.le.f32.partialorder %v2792_v19, %v2905_v50 }
 0x1d4   : > { %1929 = vmatprep.subr.msk.bf16.mxu0 %vm1928_vm7, %v2102_v56  ;;  %vm1940_vm1 = vmpackc.low %vm1608_vm3, %vm3119_vm15  ;;  %vm1605_vm7 = vcmp.le.f32.partialorder %v2778_v6, %v2901_v57 }
 0x1d5   : > { %vm1942_vm4 = vmpackc.low %vm1607_vm11, %vm1605_vm7 }
 0x1d6   : > { %vm1944_vm3 = vmpackc.low %vm1604_vm13, %vm1602_vm2 }
 0x1d7   : > { %1931 = vmatpush1.bf16.msk.msra.mxu0 %vm1930_vm0, %v2102_v56  ;;  %vm1601_vm0 = vcmp.le.f32.partialorder %v2787_v20, %v2901_v57 }
 0x1d8   : > { %1933 = vmatprep.subr.msk.bf16.mxu0 %vm1932_vm8, %v2102_v56  ;;  %vm1603_vm8 = vcmp.le.f32.partialorder %v2807_v33, %v2901_v57 }
 0x1d9   : > { %vm1946_vm5 = vmpackc.low %vm1603_vm8, %vm1601_vm0 }
 0x1db   : > { %1935 = vmatpush1.bf16.msk.msra.mxu0 %vm1934_vm10, %v2102_v56  ;;  %vm3120_vm10 = vcmp.le.f32.partialorder %v2888_v43, %v2895_v63 }
 0x1dc   : > { %1937 = vmatprep.subr.msk.bf16.mxu0 %vm1936_vm9, %v2102_v56  ;;  %v1589_v51 = vsel %vm3120_vm10, 1.0, %v3114_v4 }
 0x1dd   : > { %v1687_v6 = vrot.slane %v1589_v51, %v2891_v45  ;;  %v1691_v14 = vrot.slane %v1589_v51, %v2893_v12 }
 0x1df   : > { %1939 = vmatpush1.bf16.msk.msra.mxu0 %vm1938_vm14, %v2102_v56  ;;  %v1694_v34 = vmul.f32 0.0, %v1687_v6  ;;  %v1695_v19 = vmul.f32 0.0, %v1691_v14 }
 0x1e0   : > { %1941 = vmatprep.subr.msk.bf16.mxu0 %vm1940_vm1, %v2102_v56 }
 0x1e3   : > { %1943 = vmatpush1.bf16.msk.msra.mxu0 %vm1942_vm4, %v2102_v56 }
 0x1e4   : > { %1945 = vmatprep.subr.msk.bf16.mxu0 %vm1944_vm3, %v2102_v56 }
 0x1e7   : > { %1947 = vmatpush1.bf16.msk.msra.mxu0 %vm1946_vm5, %v2102_v56 }
 0x1ea   : > { %1730 = vmatmul.mubr.bf16.vlgmr.msra.gmra.mxu0 %v1696_v29 }
 0x2aa   : > { %v1731_v20 = vpop.f32.mrf.mxu0 }
 0x2ab   : > { %v1738_v0 = vadd.f32 %v1731_v20, %v1694_v34 }
 0x2ac   : > { %v1733_v32 = vpop.f32.mrf.mxu0 }
 0x2ad   : > { %1740 = vst [vmem:[#allocation3] sm:$0xff] %v1738_v0  ;;  %v1739_v52 = vadd.f32 %v1733_v32, %v1695_v19 }
 0x2ae   : > { %v1735_v33 = vpop.f32.mrf.mxu0 }
 0x2af   : > { %1741 = vst [vmem:[#allocation3 + $0x8] sm:$0xff] %v1739_v52 }
 0x2b0   : > { %v1736_v31 = vpop.f32.mrf.mxu0 }
 0x2b4   : > { %v1758_v11 = vld [vmem:[#allocation3] sm:$0x7] }
 0x2b6   : > { %v1754_v55 = vld [vmem:[#allocation3 + $0x3] ss:$8 sm:$0x3]  ;;  %v1759_v16 = vld [vmem:[#allocation3 + $0x8] sm:$0x7] }
 0x2b7   : > { %v1755_v61 = vmax.f32 %v1754_v55, 1.0 }
 0x2b9   : > { %2018 = vrcp.f32 %v1755_v61 }
 0x2c6   : > { %v2019_v39 = vpop.eup %2018 }
 0x2c7   : > { %v1757_v23 = vmul.f32 %v2019_v39, %v1752_v62 }
 0x2c9   : > { %v1764_v21 = vrot.slane %v1757_v23, %v2891_v45  ;;  %v1768_v54 = vrot.slane %v1757_v23, %v2893_v12 }
 0x2cb   : > { %v1771_v8 = vmul.f32 %v1764_v21, %v1758_v11  ;;  %v1772_v41 = vmul.f32 %v1768_v54, %v1759_v16 }
 0x2cd   : > { %v1775_v37 = vcombine.low %v1771_v8, %v1772_v41 }
 0x2cf   : > { %1777 = vst [vmem:[%s3003_s10] sm:$0x77] %v1775_v37 }
 0x2d0   : > { %2033 = shalt.err (!%p2030_p5)
}
 0x2d1   : > { %s2034_s5 = scalar_lea.hbm %s1795_s27, 128  ;;  %s2038_s8 = scalar_lea.hbm %s3094_s3, 256 }
 0x2d2   : > { %p2035_p6 = scmp.ne.s32.totalorder %s1795_s27, %s2034_s5  ;;  %p2039_p10 = scmp.lt.s32.totalorder %s1795_s27, %s3094_s3 }
 0x2d3   : > { %p2040_p11 = scmp.lt.s32.totalorder %s2038_s8, %s2034_s5 }
 0x2d4   : > { %p2036_p7 = pnand %p2035_p6, %p2164_p4 }
 0x2d5   : > { %p2041_p12 = por %p2040_p11, %p2039_p10 }
 0x2d6   : > { %p2037_p9 = pneg %p2036_p7 }
 0x2d8   : > { %p2042_p13 = pnand %p2041_p12, %p2037_p9 }
 0x2da   : > { %2045 = shalt.err (!%p2042_p13)
}
 0x2db   : > { %1958 = dma.vmem_to_hbm [thread:$0]  (%p2164_p4), %s1798_s21, 128, %s1795_s27, %s1781_s28  }
 0x2dc PF: > { %p1964_p0 = scmp.ge.s32.totalorder %s2096_s17, 2  ;;  %s1809_s11 = sand.u32 1, %s2076_s12  }
 0x2dd   : > { %s1810_s18 = scalar_lea.sflag [#allocation5], %s1809_s11 }
 0x2de   : > { %p1961_p1 = pnand %p1964_p0, %p2171_p8 }
 0x2e0   : > { %p1962_p2 = pneg %p1961_p1 }
 0x2e2   : > { %2071 = dma.done.wait (%p1962_p2), %s1810_s18, 128  }
 0x2e3   : > { %2073 = vsyncadd (%p1962_p2), %s1810_s18, 4294967168  ;;  %s16_s17 = sadd.s32 1, %s2096_s17   ;;  %s3121_s12 = smov %s2080_s13 }
 0x2e4   : > { %p13_p3 = scmp.ge.s32.totalorder %s16_s17, 4   ;;  %s3122_s13 = smov %s2084_s14 }
 0x2e5   : > { %s3123_s14 = smov %s2177_s25  ;;  %s3124_s15 = smov %s2092_s16 }
 0x2e6   : > { %s3125_s16 = smov %s3127_s20  ;;  %15 = sbr.rel (!%p13_p3) target bundleno = 4 (0x4), region = 83 }
 0x2eb   :  { %1815 = vsyncpa [#allocation5], 1 }
 0x2ec   :  { %1817 = vsyncpa [#allocation5 + $0x1], 1 }

</bundles_post_ra>
